<compile_context>
chip_gen: v7x
topology: tpu7x:2x2x1
jax: 0.10.0
libtpu: 0.0.40
codegen_flags: <defaults>
</compile_context>

<pallas_src>
import functools

import jax
import jax.numpy as jnp
from jax import lax
from jax.experimental import pallas as pl
from jax.experimental.pallas import tpu as pltpu


# ----------------------------- Pallas kernel --------------------------------
def lstm_chunk_kernel(*refs, num_layers, chunk, unroll):
    """Process `chunk` timesteps of a stacked LSTM recurrence.

    Refs per grid step (bi, ti):
      x_ref    : (Tc, Bc, E)        embedded inputs (time-major chunk)
      wih0_ref : (E, 4H)            layer-0 input->gate weights
      whh_ref  : (L, H, 4H)         hidden->gate weights, all layers
      wihr_ref : (L-1, H, 4H)       input->gate weights, layers 1..L-1 (L>1 only)
      b_ref    : (L, 1, 4H) f32     combined bias (b_ih + b_hh) per layer
      hout_ref : (Tc, Bc, H)        top-layer hidden state per timestep
      g0_scr   : (Tc, Bc, 4H) f32   per-chunk layer-0 input pre-activations
      h_scr    : (L, Bc, H) f32     hidden state (persists across time chunks)
      c_scr    : (L, Bc, H) f32     cell state   (persists across time chunks)
    """
    if num_layers > 1:
        (x_ref, wih0_ref, whh_ref, wihr_ref, b_ref,
         hout_ref, g0_scr, h_scr, c_scr) = refs
    else:
        (x_ref, wih0_ref, whh_ref, b_ref,
         hout_ref, g0_scr, h_scr, c_scr) = refs
        wihr_ref = None

    ti = pl.program_id(1)              # time-chunk index (sequential axis)
    _, bc, embed_dim = x_ref.shape
    H = h_scr.shape[-1]
    w_dtype = wih0_ref.dtype

    @pl.when(ti == 0)
    def _():
        # h0 = c0 = zeros for every new batch chunk (matches PyTorch forward).
        h_scr[...] = jnp.zeros_like(h_scr)
        c_scr[...] = jnp.zeros_like(c_scr)

    # ---- layer-0 input projection for the whole chunk: one batched MXU matmul.
    # Layer-0 bias folded in here (once per chunk, not once per timestep).
    x2d = x_ref[...].reshape(chunk * bc, embed_dim)
    g0 = jnp.dot(x2d, wih0_ref[...], preferred_element_type=jnp.float32)
    g0_scr[...] = g0.reshape(chunk, bc, 4 * H) + b_ref[0]

    # Hoist the remaining bias loads out of the time loop.
    b_rest = [b_ref[l] for l in range(1, num_layers)]      # each (1, 4H) f32

    def gate_update(gates, c_prev):
        # PyTorch gate order: input, forget, cell(g), output.
        i_g = jax.nn.sigmoid(gates[:, 0 * H:1 * H])
        f_g = jax.nn.sigmoid(gates[:, 1 * H:2 * H])
        g_g = jnp.tanh(gates[:, 2 * H:3 * H])
        o_g = jax.nn.sigmoid(gates[:, 3 * H:4 * H])
        c_new = f_g * c_prev + i_g * g_g
        h_new = o_g * jnp.tanh(c_new)
        return h_new, c_new

    def step(i, carry):
        # ---- layer 0: input-side matmul precomputed in g0_scr.
        h_prev = h_scr[0]
        c_prev = c_scr[0]
        gates = g0_scr[i] + jnp.dot(h_prev.astype(w_dtype), whh_ref[0],
                                    preferred_element_type=jnp.float32)
        h_new, c_new = gate_update(gates, c_prev)
        h_scr[0] = h_new
        c_scr[0] = c_new
        x = h_new

        # ---- layers 1..L-1: two accumulating dots (no concatenate copy).
        for layer in range(1, num_layers):          # static, unrolled
            h_prev = h_scr[layer]
            c_prev = c_scr[layer]
            gates = (jnp.dot(x.astype(w_dtype), wihr_ref[layer - 1],
                             preferred_element_type=jnp.float32)
                     + jnp.dot(h_prev.astype(w_dtype), whh_ref[layer],
                               preferred_element_type=jnp.float32)
                     + b_rest[layer - 1])
            h_new, c_new = gate_update(gates, c_prev)
            h_scr[layer] = h_new
            c_scr[layer] = c_new
            x = h_new

        hout_ref[i] = x.astype(hout_ref.dtype)
        return carry

    lax.fori_loop(0, chunk, step, 0, unroll=unroll)


def _resident_spec(block_shape, index_map):
    """BlockSpec for time-invariant operands: single-buffered if supported."""
    try:
        return pl.BlockSpec(block_shape, index_map,
                            pipeline_mode=pl.Buffered(1))
    except Exception:                    # older jax without pipeline_mode
        return pl.BlockSpec(block_shape, index_map)


# ------------------------------- wrapper -------------------------------------
def vanilla_lstm_forward(tokens, params, *, hidden_size, num_layers,
                         time_block=None, batch_block=None,
                         compute_dtype=jnp.float32, unroll=4):
    """tokens: (B, T) int32.  Returns logits (B, T, words_num) float32.

    compute_dtype=bf16 is supported on real TPU (MXU-native); the sandbox/CPU
    interpret backend lacks bf16 x bf16 -> f32 dots, so tests run f32.
    """
    H = hidden_size
    L = num_layers
    B, T = tokens.shape
    V, E = params["embedding"].shape

    Tc = time_block if time_block is not None else T
    Bc = batch_block if batch_block is not None else B
    assert T % Tc == 0, "seq length must be divisible by time_block"
    assert B % Bc == 0, "batch must be divisible by batch_block"

    # ---- parameter packing (matmul inputs in compute_dtype, biases in f32) ---
    emb = params["embedding"].astype(compute_dtype)                 # (V, E)
    wih0 = params["wih"][0].astype(compute_dtype)                   # (E, 4H)
    whh_all = jnp.stack(params["whh"]).astype(compute_dtype)        # (L, H, 4H)
    b_arr = jnp.stack(params["b"]).astype(jnp.float32)              # (L, 1, 4H)
    wout = params["wout"].astype(compute_dtype)                     # (H, V)
    bout = params["bout"].astype(jnp.float32)                       # (1, V)
    if L > 1:
        wihr = jnp.stack(params["wih"][1:]).astype(compute_dtype)   # (L-1, H, 4H)
    else:
        wihr = None                                                 # not passed

    # ---- hoisted, non-recurrent work ----------------------------------------
    # Embedding gather, produced time-major directly: (T, B, E).
    x_tm = jnp.take(emb, tokens.T, axis=0)

    itemsize = jnp.dtype(compute_dtype).itemsize
    out_itemsize = itemsize

    weight_bytes = (wih0.size + whh_all.size
                    + (wihr.size if wihr is not None else 0)) * itemsize \
                   + b_arr.size * 4

    # VMEM budget derived from actual tile sizes (not a fixed cap).
    x_blk = Tc * Bc * E * itemsize
    hout_blk = Tc * Bc * H * out_itemsize
    scratch_bytes = Tc * Bc * 4 * H * 4 + 2 * L * Bc * H * 4
    vmem_est = 2 * x_blk + 2 * hout_blk + 2 * weight_bytes + scratch_bytes
    vmem_limit = int(min(96 * 1024 * 1024,
                         max(32 * 1024 * 1024, int(vmem_est * 1.5) + (4 << 20))))
    # TODO(synk): on v7x (64 MiB VMEM / 2 TCs) re-derive Tc/Bc against that
    #             budget instead of clamping here.

    flops = int(2 * T * B * E * 4 * H                 # layer-0 input projection
                + 2 * T * B * H * 4 * H               # layer-0 hidden matmul
                + max(L - 1, 0) * 4 * T * B * H * 4 * H)
    transcendentals = int(5 * T * B * L * H)
    bytes_accessed = int(T * B * E * itemsize + T * B * H * out_itemsize
                         + weight_bytes)

    in_specs = [
        pl.BlockSpec((Tc, Bc, E), lambda bi, ti: (ti, bi, 0)),        # x chunk
        _resident_spec((E, 4 * H), lambda bi, ti: (0, 0)),            # W_ih[0]
        _resident_spec((L, H, 4 * H), lambda bi, ti: (0, 0, 0)),      # W_hh all
    ]
    operands = [x_tm, wih0, whh_all]
    if L > 1:
        in_specs.append(
            _resident_spec((L - 1, H, 4 * H), lambda bi, ti: (0, 0, 0)))
        operands.append(wihr)
    in_specs.append(_resident_spec((L, 1, 4 * H), lambda bi, ti: (0, 0, 0)))
    operands.append(b_arr)

    kernel = functools.partial(
        lstm_chunk_kernel, num_layers=L, chunk=Tc,
        unroll=int(max(1, min(unroll, Tc))))

    h_top = pl.pallas_call(
        kernel,
        out_shape=jax.ShapeDtypeStruct((T, B, H), compute_dtype),
        grid_spec=pltpu.PrefetchScalarGridSpec(
            num_scalar_prefetch=0,
            grid=(B // Bc, T // Tc),               # (batch chunks, time chunks)
            in_specs=in_specs,
            out_specs=pl.BlockSpec((Tc, Bc, H), lambda bi, ti: (ti, bi, 0)),
            scratch_shapes=[
                pltpu.VMEM((Tc, Bc, 4 * H), jnp.float32),  # per-chunk g0
                pltpu.VMEM((L, Bc, H), jnp.float32),       # h state
                pltpu.VMEM((L, Bc, H), jnp.float32),       # c state
            ],
        ),
        compiler_params=pltpu.CompilerParams(
            # batch axis may be sharded across v7x's 2 TCs; time is sequential.
            dimension_semantics=("parallel", "arbitrary"),
            vmem_limit_bytes=vmem_limit,
        ),
        cost_estimate=pl.CostEstimate(
            flops=flops, transcendentals=transcendentals,
            bytes_accessed=bytes_accessed),
    )(*operands)

    # ---- hoisted output Linear over all timesteps at once --------------------
    logits = jnp.einsum("tbh,hv->btv", h_top, wout,
                        preferred_element_type=jnp.float32) + bout
    return logits                                                # (B, T, V) f32


# --------------------------- pure-JAX reference -------------------------------
def reference_forward(tokens, params, *, hidden_size, num_layers):
    x = jnp.take(params["embedding"], tokens, axis=0)            # (B, T, E)
    B, T, _ = x.shape
    H = hidden_size
    h = [jnp.zeros((B, H), jnp.float32) for _ in range(num_layers)]
    c = [jnp.zeros((B, H), jnp.float32) for _ in range(num_layers)]
    outs = []
    for t in range(T):
        inp = x[:, t, :]
        for l in range(num_layers):
            gates = (inp @ params["wih"][l] + h[l] @ params["whh"][l]
                     + params["b"][l])
            i_g = jax.nn.sigmoid(gates[:, 0 * H:1 * H])
            f_g = jax.nn.sigmoid(gates[:, 1 * H:2 * H])
            g_g = jnp.tanh(gates[:, 2 * H:3 * H])
            o_g = jax.nn.sigmoid(gates[:, 3 * H:4 * H])
            c[l] = f_g * c[l] + i_g * g_g
            h[l] = o_g * jnp.tanh(c[l])
            inp = h[l]
        outs.append(inp @ params["wout"] + params["bout"])
    return jnp.stack(outs, axis=1)                               # (B, T, V)


# --------------------------------- main ---------------------------------------
if __name__ == "__main__":
    # Small, module-consistent shapes.  batch=16 / batch_block=8 so the block
    # fills >= 8 sublanes and the "parallel" batch axis has 2 chunks.
    words_num = 64        # vocab size V
    embedding_dim = 16    # E
    hidden_size = 32      # H
    num_layers = 2        # L
    batch = 16
    seq = 8

    key = jax.random.PRNGKey(0)
    keys = jax.random.split(key, 10)
    scale = 1.0 / (hidden_size ** 0.5)

    def uni(k, shape):
        return jax.random.uniform(k, shape, jnp.float32, -scale, scale)

    wih = [uni(keys[1], (embedding_dim, 4 * hidden_size))]
    whh = [uni(keys[2], (hidden_size, 4 * hidden_size))]
    bias = [uni(keys[3], (1, 4 * hidden_size))]        # b_ih + b_hh combined
    if num_layers > 1:
        sub = jax.random.split(keys[7], 3 * (num_layers - 1))
        for l in range(1, num_layers):
            wih.append(uni(sub[3 * (l - 1) + 0], (hidden_size, 4 * hidden_size)))
            whh.append(uni(sub[3 * (l - 1) + 1], (hidden_size, 4 * hidden_size)))
            bias.append(uni(sub[3 * (l - 1) + 2], (1, 4 * hidden_size)))

    params = {
        "embedding": jax.random.normal(
            keys[0], (words_num, embedding_dim), jnp.float32),
        "wih": wih,        # layer 0: (E,4H); layers>=1: (H,4H)
        "whh": whh,        # (H,4H) per layer
        "b": bias,         # (1,4H) per layer (b_ih + b_hh)
        "wout": uni(keys[4], (hidden_size, words_num)),   # Linear W^T: (H, V)
        "bout": uni(keys[5], (1, words_num)),             # Linear bias
    }

    tokens = jax.random.randint(keys[6], (batch, seq), 0, words_num,
                                dtype=jnp.int32)

    # ---- multi-layer run (2 time chunks x 2 batch chunks) --------------------
    ref = reference_forward(
        tokens, params, hidden_size=hidden_size, num_layers=num_layers)
    out = vanilla_lstm_forward(
        tokens, params, hidden_size=hidden_size, num_layers=num_layers,
        time_block=4, batch_block=8, compute_dtype=jnp.float32)
    out = jax.block_until_ready(out)
    assert out.shape == (batch, seq, words_num)
    assert jnp.allclose(out, ref, atol=1e-4, rtol=1e-4), "mismatch vs reference"

    # ---- single-layer run (exercises the no-dummy-weights path) --------------
    params1 = {
        "embedding": params["embedding"],
        "wih": params["wih"][:1], "whh": params["whh"][:1], "b": params["b"][:1],
        "wout": params["wout"], "bout": params["bout"],
    }
    ref1 = reference_forward(
        tokens, params1, hidden_size=hidden_size, num_layers=1)
    out1 = vanilla_lstm_forward(
        tokens, params1, hidden_size=hidden_size, num_layers=1,
        time_block=4, batch_block=8, compute_dtype=jnp.float32)
    out1 = jax.block_until_ready(out1)
    assert out1.shape == (batch, seq, words_num)
    assert jnp.allclose(out1, ref1, atol=1e-4, rtol=1e-4), "L=1 mismatch"

    print("KERNEL_OK")
</pallas_src>

<mosaic_0001>
module attributes {stable_mosaic.version = 11 : i64} {
  func.func @lstm_chunk_kernel(%arg0: i32, %arg1: i32, %arg2: memref<4x8x16xf32, #tpu.memory_space<vmem>>, %arg3: memref<16x128xf32, #tpu.memory_space<vmem>>, %arg4: memref<2x32x128xf32, #tpu.memory_space<vmem>>, %arg5: memref<1x32x128xf32, #tpu.memory_space<vmem>>, %arg6: memref<2x1x128xf32, #tpu.memory_space<vmem>>, %arg7: memref<4x8x32xf32, #tpu.memory_space<vmem>>, %arg8: memref<4x8x128xf32, #tpu.memory_space<vmem>>, %arg9: memref<2x8x32xf32, #tpu.memory_space<vmem>>, %arg10: memref<2x8x32xf32, #tpu.memory_space<vmem>>) attributes {dimension_semantics = [#tpu.dimension_semantics<parallel>, #tpu.dimension_semantics<arbitrary>], iteration_bounds = array<i64: 2, 2>, scalar_prefetch = 0 : i64, scratch_operands = 3 : i64, tpu.core_type = #tpu.core_type<tc>, window_params = [{transform_indices = @transform_0, window_bounds = array<i64: 4, 8, 16>}, {pipeline_mode = #tpu.pipeline_mode<synchronous>, transform_indices = @transform_1, window_bounds = array<i64: 16, 128>}, {pipeline_mode = #tpu.pipeline_mode<synchronous>, transform_indices = @transform_2, window_bounds = array<i64: 2, 32, 128>}, {pipeline_mode = #tpu.pipeline_mode<synchronous>, transform_indices = @transform_3, window_bounds = array<i64: 1, 32, 128>}, {pipeline_mode = #tpu.pipeline_mode<synchronous>, transform_indices = @transform_4, window_bounds = array<i64: 2, 1, 128>}, {transform_indices = @transform_5, window_bounds = array<i64: 4, 8, 32>}]} {
    %c0_i32 = arith.constant 0 : i32
    %0 = arith.cmpi eq, %arg1, %c0_i32 : i32
    %1 = arith.extui %0 : i1 to i32
    %c0_i32_0 = arith.constant 0 : i32
    %2 = arith.cmpi ne, %1, %c0_i32_0 : i32
    scf.if %2 {
      %cst_198 = arith.constant 0.000000e+00 : f32
      %376 = vector.broadcast %cst_198 : f32 to vector<2x8x32xf32>
      %c0_199 = arith.constant 0 : index
      %c0_200 = arith.constant 0 : index
      %c0_201 = arith.constant 0 : index
      %377 = vector.load %arg9[%c0_199, %c0_200, %c0_201] : memref<2x8x32xf32, #tpu.memory_space<vmem>>, vector<2x8x32xf32>
      tpu.vector_store %arg9[%c0_199, %c0_200, %c0_201], %376 {strides = array<i32>} : memref<2x8x32xf32, #tpu.memory_space<vmem>>, vector<2x8x32xf32>,
      %cst_202 = arith.constant 0.000000e+00 : f32
      %378 = vector.broadcast %cst_202 : f32 to vector<2x8x32xf32>
      %c0_203 = arith.constant 0 : index
      %c0_204 = arith.constant 0 : index
      %c0_205 = arith.constant 0 : index
      %379 = vector.load %arg10[%c0_203, %c0_204, %c0_205] : memref<2x8x32xf32, #tpu.memory_space<vmem>>, vector<2x8x32xf32>
      tpu.vector_store %arg10[%c0_203, %c0_204, %c0_205], %378 {strides = array<i32>} : memref<2x8x32xf32, #tpu.memory_space<vmem>>, vector<2x8x32xf32>,
    } else {
    }
    %c0 = arith.constant 0 : index
    %c0_1 = arith.constant 0 : index
    %c0_2 = arith.constant 0 : index
    %3 = vector.load %arg2[%c0, %c0_1, %c0_2] : memref<4x8x16xf32, #tpu.memory_space<vmem>>, vector<4x8x16xf32>
    %4 = vector.shape_cast %3 : vector<4x8x16xf32> to vector<32x16xf32>
    %c0_3 = arith.constant 0 : index
    %c0_4 = arith.constant 0 : index
    %5 = vector.load %arg3[%c0_3, %c0_4] : memref<16x128xf32, #tpu.memory_space<vmem>>, vector<16x128xf32>
    %cst = arith.constant dense<0.000000e+00> : vector<32x128xf32>
    %6 = tpu.matmul %4, %5, %cst {dimension_numbers = #tpu.dot_dimension_numbers<[1], [0], [0], [1], [0, 0, 1, 1], [], []>} : vector<32x16xf32>, vector<16x128xf32>, vector<32x128xf32> -> vector<32x128xf32>
    %7 = vector.shape_cast %6 : vector<32x128xf32> to vector<4x8x128xf32>
    %c0_5 = arith.constant 0 : index
    %c0_6 = arith.constant 0 : index
    %c0_7 = arith.constant 0 : index
    %8 = vector.load %arg6[%c0_5, %c0_6, %c0_7] : memref<2x1x128xf32, #tpu.memory_space<vmem>>, vector<1x1x128xf32>
    %9 = vector.shape_cast %8 : vector<1x1x128xf32> to vector<1x128xf32>
    %10 = vector.shape_cast %9 : vector<1x128xf32> to vector<1x1x128xf32>
    %11 = vector.broadcast %10 : vector<1x1x128xf32> to vector<4x8x128xf32>
    %12 = arith.addf %7, %11 : vector<4x8x128xf32>
    %c0_8 = arith.constant 0 : index
    %c0_9 = arith.constant 0 : index
    %c0_10 = arith.constant 0 : index
    %13 = vector.load %arg8[%c0_8, %c0_9, %c0_10] : memref<4x8x128xf32, #tpu.memory_space<vmem>>, vector<4x8x128xf32>
    tpu.vector_store %arg8[%c0_8, %c0_9, %c0_10], %12 {strides = array<i32>} : memref<4x8x128xf32, #tpu.memory_space<vmem>>, vector<4x8x128xf32>,
    %c1 = arith.constant 1 : index
    %c0_11 = arith.constant 0 : index
    %c0_12 = arith.constant 0 : index
    %14 = vector.load %arg6[%c1, %c0_11, %c0_12] : memref<2x1x128xf32, #tpu.memory_space<vmem>>, vector<1x1x128xf32>
    %15 = vector.shape_cast %14 : vector<1x1x128xf32> to vector<1x128xf32>
    %c0_i32_13 = arith.constant 0 : i32
    %c0_14 = arith.constant 0 : index
    %c0_15 = arith.constant 0 : index
    %c0_16 = arith.constant 0 : index
    %16 = vector.load %arg9[%c0_14, %c0_15, %c0_16] : memref<2x8x32xf32, #tpu.memory_space<vmem>>, vector<1x8x32xf32>
    %17 = vector.shape_cast %16 : vector<1x8x32xf32> to vector<8x32xf32>
    %c0_17 = arith.constant 0 : index
    %c0_18 = arith.constant 0 : index
    %c0_19 = arith.constant 0 : index
    %18 = vector.load %arg10[%c0_17, %c0_18, %c0_19] : memref<2x8x32xf32, #tpu.memory_space<vmem>>, vector<1x8x32xf32>
    %19 = vector.shape_cast %18 : vector<1x8x32xf32> to vector<8x32xf32>
    %20 = arith.index_cast %c0_i32_13 : i32 to index
    %c0_20 = arith.constant 0 : index
    %c0_21 = arith.constant 0 : index
    %21 = vector.load %arg8[%20, %c0_20, %c0_21] : memref<4x8x128xf32, #tpu.memory_space<vmem>>, vector<1x8x128xf32>
    %22 = vector.shape_cast %21 : vector<1x8x128xf32> to vector<8x128xf32>
    %c0_22 = arith.constant 0 : index
    %c0_23 = arith.constant 0 : index
    %c0_24 = arith.constant 0 : index
    %23 = vector.load %arg4[%c0_22, %c0_23, %c0_24] : memref<2x32x128xf32, #tpu.memory_space<vmem>>, vector<1x32x128xf32>
    %24 = vector.shape_cast %23 : vector<1x32x128xf32> to vector<32x128xf32>
    %cst_25 = arith.constant dense<0.000000e+00> : vector<8x128xf32>
    %25 = tpu.matmul %17, %24, %cst_25 {dimension_numbers = #tpu.dot_dimension_numbers<[1], [0], [0], [1], [0, 0, 1, 1], [], []>} : vector<8x32xf32>, vector<32x128xf32>, vector<8x128xf32> -> vector<8x128xf32>
    %26 = arith.addf %22, %25 : vector<8x128xf32>
    %27 = vector.extract_strided_slice %26 {offsets = [0, 0], sizes = [8, 32], strides = [1, 1]} : vector<8x128xf32> to vector<8x32xf32>
    %28 = arith.negf %27 : vector<8x32xf32>
    %29 = math.exp %28 : vector<8x32xf32>
    %cst_26 = arith.constant 1.000000e+00 : f32
    %30 = vector.broadcast %cst_26 : f32 to vector<8x32xf32>
    %31 = arith.addf %30, %29 : vector<8x32xf32>
    %32 = arith.divf %30, %31 : vector<8x32xf32>
    %33 = vector.extract_strided_slice %26 {offsets = [0, 32], sizes = [8, 32], strides = [1, 1]} : vector<8x128xf32> to vector<8x32xf32>
    %34 = arith.negf %33 : vector<8x32xf32>
    %35 = math.exp %34 : vector<8x32xf32>
    %cst_27 = arith.constant 1.000000e+00 : f32
    %36 = vector.broadcast %cst_27 : f32 to vector<8x32xf32>
    %37 = arith.addf %36, %35 : vector<8x32xf32>
    %38 = arith.divf %36, %37 : vector<8x32xf32>
    %39 = vector.extract_strided_slice %26 {offsets = [0, 64], sizes = [8, 32], strides = [1, 1]} : vector<8x128xf32> to vector<8x32xf32>
    %40 = math.tanh %39 : vector<8x32xf32>
    %41 = vector.extract_strided_slice %26 {offsets = [0, 96], sizes = [8, 32], strides = [1, 1]} : vector<8x128xf32> to vector<8x32xf32>
    %42 = arith.negf %41 : vector<8x32xf32>
    %43 = math.exp %42 : vector<8x32xf32>
    %cst_28 = arith.constant 1.000000e+00 : f32
    %44 = vector.broadcast %cst_28 : f32 to vector<8x32xf32>
    %45 = arith.addf %44, %43 : vector<8x32xf32>
    %46 = arith.divf %44, %45 : vector<8x32xf32>
    %47 = arith.mulf %38, %19 : vector<8x32xf32>
    %48 = arith.mulf %32, %40 : vector<8x32xf32>
    %49 = arith.addf %47, %48 : vector<8x32xf32>
    %50 = math.tanh %49 : vector<8x32xf32>
    %51 = arith.mulf %46, %50 : vector<8x32xf32>
    %c0_29 = arith.constant 0 : index
    %c0_30 = arith.constant 0 : index
    %c0_31 = arith.constant 0 : index
    %52 = vector.load %arg9[%c0_29, %c0_30, %c0_31] : memref<2x8x32xf32, #tpu.memory_space<vmem>>, vector<1x8x32xf32>
    %53 = vector.shape_cast %52 : vector<1x8x32xf32> to vector<8x32xf32>
    %54 = vector.shape_cast %51 : vector<8x32xf32> to vector<1x8x32xf32>
    tpu.vector_store %arg9[%c0_29, %c0_30, %c0_31], %54 {strides = array<i32>} : memref<2x8x32xf32, #tpu.memory_space<vmem>>, vector<1x8x32xf32>,
    %c0_32 = arith.constant 0 : index
    %c0_33 = arith.constant 0 : index
    %c0_34 = arith.constant 0 : index
    %55 = vector.load %arg10[%c0_32, %c0_33, %c0_34] : memref<2x8x32xf32, #tpu.memory_space<vmem>>, vector<1x8x32xf32>
    %56 = vector.shape_cast %55 : vector<1x8x32xf32> to vector<8x32xf32>
    %57 = vector.shape_cast %49 : vector<8x32xf32> to vector<1x8x32xf32>
    tpu.vector_store %arg10[%c0_32, %c0_33, %c0_34], %57 {strides = array<i32>} : memref<2x8x32xf32, #tpu.memory_space<vmem>>, vector<1x8x32xf32>,
    %c1_35 = arith.constant 1 : index
    %c0_36 = arith.constant 0 : index
    %c0_37 = arith.constant 0 : index
    %58 = vector.load %arg9[%c1_35, %c0_36, %c0_37] : memref<2x8x32xf32, #tpu.memory_space<vmem>>, vector<1x8x32xf32>
    %59 = vector.shape_cast %58 : vector<1x8x32xf32> to vector<8x32xf32>
    %c1_38 = arith.constant 1 : index
    %c0_39 = arith.constant 0 : index
    %c0_40 = arith.constant 0 : index
    %60 = vector.load %arg10[%c1_38, %c0_39, %c0_40] : memref<2x8x32xf32, #tpu.memory_space<vmem>>, vector<1x8x32xf32>
    %61 = vector.shape_cast %60 : vector<1x8x32xf32> to vector<8x32xf32>
    %c0_41 = arith.constant 0 : index
    %c0_42 = arith.constant 0 : index
    %c0_43 = arith.constant 0 : index
    %62 = vector.load %arg5[%c0_41, %c0_42, %c0_43] : memref<1x32x128xf32, #tpu.memory_space<vmem>>, vector<1x32x128xf32>
    %63 = vector.shape_cast %62 : vector<1x32x128xf32> to vector<32x128xf32>
    %cst_44 = arith.constant dense<0.000000e+00> : vector<8x128xf32>
    %64 = tpu.matmul %51, %63, %cst_44 {dimension_numbers = #tpu.dot_dimension_numbers<[1], [0], [0], [1], [0, 0, 1, 1], [], []>} : vector<8x32xf32>, vector<32x128xf32>, vector<8x128xf32> -> vector<8x128xf32>
    %c1_45 = arith.constant 1 : index
    %c0_46 = arith.constant 0 : index
    %c0_47 = arith.constant 0 : index
    %65 = vector.load %arg4[%c1_45, %c0_46, %c0_47] : memref<2x32x128xf32, #tpu.memory_space<vmem>>, vector<1x32x128xf32>
    %66 = vector.shape_cast %65 : vector<1x32x128xf32> to vector<32x128xf32>
    %cst_48 = arith.constant dense<0.000000e+00> : vector<8x128xf32>
    %67 = tpu.matmul %59, %66, %cst_48 {dimension_numbers = #tpu.dot_dimension_numbers<[1], [0], [0], [1], [0, 0, 1, 1], [], []>} : vector<8x32xf32>, vector<32x128xf32>, vector<8x128xf32> -> vector<8x128xf32>
    %68 = arith.addf %64, %67 : vector<8x128xf32>
    %69 = vector.broadcast %15 : vector<1x128xf32> to vector<8x128xf32>
    %70 = arith.addf %68, %69 : vector<8x128xf32>
    %71 = vector.extract_strided_slice %70 {offsets = [0, 0], sizes = [8, 32], strides = [1, 1]} : vector<8x128xf32> to vector<8x32xf32>
    %72 = arith.negf %71 : vector<8x32xf32>
    %73 = math.exp %72 : vector<8x32xf32>
    %cst_49 = arith.constant 1.000000e+00 : f32
    %74 = vector.broadcast %cst_49 : f32 to vector<8x32xf32>
    %75 = arith.addf %74, %73 : vector<8x32xf32>
    %76 = arith.divf %74, %75 : vector<8x32xf32>
    %77 = vector.extract_strided_slice %70 {offsets = [0, 32], sizes = [8, 32], strides = [1, 1]} : vector<8x128xf32> to vector<8x32xf32>
    %78 = arith.negf %77 : vector<8x32xf32>
    %79 = math.exp %78 : vector<8x32xf32>
    %cst_50 = arith.constant 1.000000e+00 : f32
    %80 = vector.broadcast %cst_50 : f32 to vector<8x32xf32>
    %81 = arith.addf %80, %79 : vector<8x32xf32>
    %82 = arith.divf %80, %81 : vector<8x32xf32>
    %83 = vector.extract_strided_slice %70 {offsets = [0, 64], sizes = [8, 32], strides = [1, 1]} : vector<8x128xf32> to vector<8x32xf32>
    %84 = math.tanh %83 : vector<8x32xf32>
    %85 = vector.extract_strided_slice %70 {offsets = [0, 96], sizes = [8, 32], strides = [1, 1]} : vector<8x128xf32> to vector<8x32xf32>
    %86 = arith.negf %85 : vector<8x32xf32>
    %87 = math.exp %86 : vector<8x32xf32>
    %cst_51 = arith.constant 1.000000e+00 : f32
    %88 = vector.broadcast %cst_51 : f32 to vector<8x32xf32>
    %89 = arith.addf %88, %87 : vector<8x32xf32>
    %90 = arith.divf %88, %89 : vector<8x32xf32>
    %91 = arith.mulf %82, %61 : vector<8x32xf32>
    %92 = arith.mulf %76, %84 : vector<8x32xf32>
    %93 = arith.addf %91, %92 : vector<8x32xf32>
    %94 = math.tanh %93 : vector<8x32xf32>
    %95 = arith.mulf %90, %94 : vector<8x32xf32>
    %c1_52 = arith.constant 1 : index
    %c0_53 = arith.constant 0 : index
    %c0_54 = arith.constant 0 : index
    %96 = vector.load %arg9[%c1_52, %c0_53, %c0_54] : memref<2x8x32xf32, #tpu.memory_space<vmem>>, vector<1x8x32xf32>
    %97 = vector.shape_cast %96 : vector<1x8x32xf32> to vector<8x32xf32>
    %98 = vector.shape_cast %95 : vector<8x32xf32> to vector<1x8x32xf32>
    tpu.vector_store %arg9[%c1_52, %c0_53, %c0_54], %98 {strides = array<i32>} : memref<2x8x32xf32, #tpu.memory_space<vmem>>, vector<1x8x32xf32>,
    %c1_55 = arith.constant 1 : index
    %c0_56 = arith.constant 0 : index
    %c0_57 = arith.constant 0 : index
    %99 = vector.load %arg10[%c1_55, %c0_56, %c0_57] : memref<2x8x32xf32, #tpu.memory_space<vmem>>, vector<1x8x32xf32>
    %100 = vector.shape_cast %99 : vector<1x8x32xf32> to vector<8x32xf32>
    %101 = vector.shape_cast %93 : vector<8x32xf32> to vector<1x8x32xf32>
    tpu.vector_store %arg10[%c1_55, %c0_56, %c0_57], %101 {strides = array<i32>} : memref<2x8x32xf32, #tpu.memory_space<vmem>>, vector<1x8x32xf32>,
    %102 = arith.index_cast %c0_i32_13 : i32 to index
    %c0_58 = arith.constant 0 : index
    %c0_59 = arith.constant 0 : index
    %103 = vector.load %arg7[%102, %c0_58, %c0_59] : memref<4x8x32xf32, #tpu.memory_space<vmem>>, vector<1x8x32xf32>
    %104 = vector.shape_cast %103 : vector<1x8x32xf32> to vector<8x32xf32>
    %105 = vector.shape_cast %95 : vector<8x32xf32> to vector<1x8x32xf32>
    tpu.vector_store %arg7[%102, %c0_58, %c0_59], %105 {strides = array<i32>} : memref<4x8x32xf32, #tpu.memory_space<vmem>>, vector<1x8x32xf32>,
    %c1_i32 = arith.constant 1 : i32
    %c0_60 = arith.constant 0 : index
    %c0_61 = arith.constant 0 : index
    %c0_62 = arith.constant 0 : index
    %106 = vector.load %arg9[%c0_60, %c0_61, %c0_62] : memref<2x8x32xf32, #tpu.memory_space<vmem>>, vector<1x8x32xf32>
    %107 = vector.shape_cast %106 : vector<1x8x32xf32> to vector<8x32xf32>
    %c0_63 = arith.constant 0 : index
    %c0_64 = arith.constant 0 : index
    %c0_65 = arith.constant 0 : index
    %108 = vector.load %arg10[%c0_63, %c0_64, %c0_65] : memref<2x8x32xf32, #tpu.memory_space<vmem>>, vector<1x8x32xf32>
    %109 = vector.shape_cast %108 : vector<1x8x32xf32> to vector<8x32xf32>
    %110 = arith.index_cast %c1_i32 : i32 to index
    %c0_66 = arith.constant 0 : index
    %c0_67 = arith.constant 0 : index
    %111 = vector.load %arg8[%110, %c0_66, %c0_67] : memref<4x8x128xf32, #tpu.memory_space<vmem>>, vector<1x8x128xf32>
    %112 = vector.shape_cast %111 : vector<1x8x128xf32> to vector<8x128xf32>
    %c0_68 = arith.constant 0 : index
    %c0_69 = arith.constant 0 : index
    %c0_70 = arith.constant 0 : index
    %113 = vector.load %arg4[%c0_68, %c0_69, %c0_70] : memref<2x32x128xf32, #tpu.memory_space<vmem>>, vector<1x32x128xf32>
    %114 = vector.shape_cast %113 : vector<1x32x128xf32> to vector<32x128xf32>
    %cst_71 = arith.constant dense<0.000000e+00> : vector<8x128xf32>
    %115 = tpu.matmul %107, %114, %cst_71 {dimension_numbers = #tpu.dot_dimension_numbers<[1], [0], [0], [1], [0, 0, 1, 1], [], []>} : vector<8x32xf32>, vector<32x128xf32>, vector<8x128xf32> -> vector<8x128xf32>
    %116 = arith.addf %112, %115 : vector<8x128xf32>
    %117 = vector.extract_strided_slice %116 {offsets = [0, 0], sizes = [8, 32], strides = [1, 1]} : vector<8x128xf32> to vector<8x32xf32>
    %118 = arith.negf %117 : vector<8x32xf32>
    %119 = math.exp %118 : vector<8x32xf32>
    %cst_72 = arith.constant 1.000000e+00 : f32
    %120 = vector.broadcast %cst_72 : f32 to vector<8x32xf32>
    %121 = arith.addf %120, %119 : vector<8x32xf32>
    %122 = arith.divf %120, %121 : vector<8x32xf32>
    %123 = vector.extract_strided_slice %116 {offsets = [0, 32], sizes = [8, 32], strides = [1, 1]} : vector<8x128xf32> to vector<8x32xf32>
    %124 = arith.negf %123 : vector<8x32xf32>
    %125 = math.exp %124 : vector<8x32xf32>
    %cst_73 = arith.constant 1.000000e+00 : f32
    %126 = vector.broadcast %cst_73 : f32 to vector<8x32xf32>
    %127 = arith.addf %126, %125 : vector<8x32xf32>
    %128 = arith.divf %126, %127 : vector<8x32xf32>
    %129 = vector.extract_strided_slice %116 {offsets = [0, 64], sizes = [8, 32], strides = [1, 1]} : vector<8x128xf32> to vector<8x32xf32>
    %130 = math.tanh %129 : vector<8x32xf32>
    %131 = vector.extract_strided_slice %116 {offsets = [0, 96], sizes = [8, 32], strides = [1, 1]} : vector<8x128xf32> to vector<8x32xf32>
    %132 = arith.negf %131 : vector<8x32xf32>
    %133 = math.exp %132 : vector<8x32xf32>
    %cst_74 = arith.constant 1.000000e+00 : f32
    %134 = vector.broadcast %cst_74 : f32 to vector<8x32xf32>
    %135 = arith.addf %134, %133 : vector<8x32xf32>
    %136 = arith.divf %134, %135 : vector<8x32xf32>
    %137 = arith.mulf %128, %109 : vector<8x32xf32>
    %138 = arith.mulf %122, %130 : vector<8x32xf32>
    %139 = arith.addf %137, %138 : vector<8x32xf32>
    %140 = math.tanh %139 : vector<8x32xf32>
    %141 = arith.mulf %136, %140 : vector<8x32xf32>
    %c0_75 = arith.constant 0 : index
    %c0_76 = arith.constant 0 : index
    %c0_77 = arith.constant 0 : index
    %142 = vector.load %arg9[%c0_75, %c0_76, %c0_77] : memref<2x8x32xf32, #tpu.memory_space<vmem>>, vector<1x8x32xf32>
    %143 = vector.shape_cast %142 : vector<1x8x32xf32> to vector<8x32xf32>
    %144 = vector.shape_cast %141 : vector<8x32xf32> to vector<1x8x32xf32>
    tpu.vector_store %arg9[%c0_75, %c0_76, %c0_77], %144 {strides = array<i32>} : memref<2x8x32xf32, #tpu.memory_space<vmem>>, vector<1x8x32xf32>,
    %c0_78 = arith.constant 0 : index
    %c0_79 = arith.constant 0 : index
    %c0_80 = arith.constant 0 : index
    %145 = vector.load %arg10[%c0_78, %c0_79, %c0_80] : memref<2x8x32xf32, #tpu.memory_space<vmem>>, vector<1x8x32xf32>
    %146 = vector.shape_cast %145 : vector<1x8x32xf32> to vector<8x32xf32>
    %147 = vector.shape_cast %139 : vector<8x32xf32> to vector<1x8x32xf32>
    tpu.vector_store %arg10[%c0_78, %c0_79, %c0_80], %147 {strides = array<i32>} : memref<2x8x32xf32, #tpu.memory_space<vmem>>, vector<1x8x32xf32>,
    %c1_81 = arith.constant 1 : index
    %c0_82 = arith.constant 0 : index
    %c0_83 = arith.constant 0 : index
    %148 = vector.load %arg9[%c1_81, %c0_82, %c0_83] : memref<2x8x32xf32, #tpu.memory_space<vmem>>, vector<1x8x32xf32>
    %149 = vector.shape_cast %148 : vector<1x8x32xf32> to vector<8x32xf32>
    %c1_84 = arith.constant 1 : index
    %c0_85 = arith.constant 0 : index
    %c0_86 = arith.constant 0 : index
    %150 = vector.load %arg10[%c1_84, %c0_85, %c0_86] : memref<2x8x32xf32, #tpu.memory_space<vmem>>, vector<1x8x32xf32>
    %151 = vector.shape_cast %150 : vector<1x8x32xf32> to vector<8x32xf32>
    %c0_87 = arith.constant 0 : index
    %c0_88 = arith.constant 0 : index
    %c0_89 = arith.constant 0 : index
    %152 = vector.load %arg5[%c0_87, %c0_88, %c0_89] : memref<1x32x128xf32, #tpu.memory_space<vmem>>, vector<1x32x128xf32>
    %153 = vector.shape_cast %152 : vector<1x32x128xf32> to vector<32x128xf32>
    %cst_90 = arith.constant dense<0.000000e+00> : vector<8x128xf32>
    %154 = tpu.matmul %141, %153, %cst_90 {dimension_numbers = #tpu.dot_dimension_numbers<[1], [0], [0], [1], [0, 0, 1, 1], [], []>} : vector<8x32xf32>, vector<32x128xf32>, vector<8x128xf32> -> vector<8x128xf32>
    %c1_91 = arith.constant 1 : index
    %c0_92 = arith.constant 0 : index
    %c0_93 = arith.constant 0 : index
    %155 = vector.load %arg4[%c1_91, %c0_92, %c0_93] : memref<2x32x128xf32, #tpu.memory_space<vmem>>, vector<1x32x128xf32>
    %156 = vector.shape_cast %155 : vector<1x32x128xf32> to vector<32x128xf32>
    %cst_94 = arith.constant dense<0.000000e+00> : vector<8x128xf32>
    %157 = tpu.matmul %149, %156, %cst_94 {dimension_numbers = #tpu.dot_dimension_numbers<[1], [0], [0], [1], [0, 0, 1, 1], [], []>} : vector<8x32xf32>, vector<32x128xf32>, vector<8x128xf32> -> vector<8x128xf32>
    %158 = arith.addf %154, %157 : vector<8x128xf32>
    %159 = vector.broadcast %15 : vector<1x128xf32> to vector<8x128xf32>
    %160 = arith.addf %158, %159 : vector<8x128xf32>
    %161 = vector.extract_strided_slice %160 {offsets = [0, 0], sizes = [8, 32], strides = [1, 1]} : vector<8x128xf32> to vector<8x32xf32>
    %162 = arith.negf %161 : vector<8x32xf32>
    %163 = math.exp %162 : vector<8x32xf32>
    %cst_95 = arith.constant 1.000000e+00 : f32
    %164 = vector.broadcast %cst_95 : f32 to vector<8x32xf32>
    %165 = arith.addf %164, %163 : vector<8x32xf32>
    %166 = arith.divf %164, %165 : vector<8x32xf32>
    %167 = vector.extract_strided_slice %160 {offsets = [0, 32], sizes = [8, 32], strides = [1, 1]} : vector<8x128xf32> to vector<8x32xf32>
    %168 = arith.negf %167 : vector<8x32xf32>
    %169 = math.exp %168 : vector<8x32xf32>
    %cst_96 = arith.constant 1.000000e+00 : f32
    %170 = vector.broadcast %cst_96 : f32 to vector<8x32xf32>
    %171 = arith.addf %170, %169 : vector<8x32xf32>
    %172 = arith.divf %170, %171 : vector<8x32xf32>
    %173 = vector.extract_strided_slice %160 {offsets = [0, 64], sizes = [8, 32], strides = [1, 1]} : vector<8x128xf32> to vector<8x32xf32>
    %174 = math.tanh %173 : vector<8x32xf32>
    %175 = vector.extract_strided_slice %160 {offsets = [0, 96], sizes = [8, 32], strides = [1, 1]} : vector<8x128xf32> to vector<8x32xf32>
    %176 = arith.negf %175 : vector<8x32xf32>
    %177 = math.exp %176 : vector<8x32xf32>
    %cst_97 = arith.constant 1.000000e+00 : f32
    %178 = vector.broadcast %cst_97 : f32 to vector<8x32xf32>
    %179 = arith.addf %178, %177 : vector<8x32xf32>
    %180 = arith.divf %178, %179 : vector<8x32xf32>
    %181 = arith.mulf %172, %151 : vector<8x32xf32>
    %182 = arith.mulf %166, %174 : vector<8x32xf32>
    %183 = arith.addf %181, %182 : vector<8x32xf32>
    %184 = math.tanh %183 : vector<8x32xf32>
    %185 = arith.mulf %180, %184 : vector<8x32xf32>
    %c1_98 = arith.constant 1 : index
    %c0_99 = arith.constant 0 : index
    %c0_100 = arith.constant 0 : index
    %186 = vector.load %arg9[%c1_98, %c0_99, %c0_100] : memref<2x8x32xf32, #tpu.memory_space<vmem>>, vector<1x8x32xf32>
    %187 = vector.shape_cast %186 : vector<1x8x32xf32> to vector<8x32xf32>
    %188 = vector.shape_cast %185 : vector<8x32xf32> to vector<1x8x32xf32>
    tpu.vector_store %arg9[%c1_98, %c0_99, %c0_100], %188 {strides = array<i32>} : memref<2x8x32xf32, #tpu.memory_space<vmem>>, vector<1x8x32xf32>,
    %c1_101 = arith.constant 1 : index
    %c0_102 = arith.constant 0 : index
    %c0_103 = arith.constant 0 : index
    %189 = vector.load %arg10[%c1_101, %c0_102, %c0_103] : memref<2x8x32xf32, #tpu.memory_space<vmem>>, vector<1x8x32xf32>
    %190 = vector.shape_cast %189 : vector<1x8x32xf32> to vector<8x32xf32>
    %191 = vector.shape_cast %183 : vector<8x32xf32> to vector<1x8x32xf32>
    tpu.vector_store %arg10[%c1_101, %c0_102, %c0_103], %191 {strides = array<i32>} : memref<2x8x32xf32, #tpu.memory_space<vmem>>, vector<1x8x32xf32>,
    %192 = arith.index_cast %c1_i32 : i32 to index
    %c0_104 = arith.constant 0 : index
    %c0_105 = arith.constant 0 : index
    %193 = vector.load %arg7[%192, %c0_104, %c0_105] : memref<4x8x32xf32, #tpu.memory_space<vmem>>, vector<1x8x32xf32>
    %194 = vector.shape_cast %193 : vector<1x8x32xf32> to vector<8x32xf32>
    %195 = vector.shape_cast %185 : vector<8x32xf32> to vector<1x8x32xf32>
    tpu.vector_store %arg7[%192, %c0_104, %c0_105], %195 {strides = array<i32>} : memref<4x8x32xf32, #tpu.memory_space<vmem>>, vector<1x8x32xf32>,
    %c2_i32 = arith.constant 2 : i32
    %c0_106 = arith.constant 0 : index
    %c0_107 = arith.constant 0 : index
    %c0_108 = arith.constant 0 : index
    %196 = vector.load %arg9[%c0_106, %c0_107, %c0_108] : memref<2x8x32xf32, #tpu.memory_space<vmem>>, vector<1x8x32xf32>
    %197 = vector.shape_cast %196 : vector<1x8x32xf32> to vector<8x32xf32>
    %c0_109 = arith.constant 0 : index
    %c0_110 = arith.constant 0 : index
    %c0_111 = arith.constant 0 : index
    %198 = vector.load %arg10[%c0_109, %c0_110, %c0_111] : memref<2x8x32xf32, #tpu.memory_space<vmem>>, vector<1x8x32xf32>
    %199 = vector.shape_cast %198 : vector<1x8x32xf32> to vector<8x32xf32>
    %200 = arith.index_cast %c2_i32 : i32 to index
    %c0_112 = arith.constant 0 : index
    %c0_113 = arith.constant 0 : index
    %201 = vector.load %arg8[%200, %c0_112, %c0_113] : memref<4x8x128xf32, #tpu.memory_space<vmem>>, vector<1x8x128xf32>
    %202 = vector.shape_cast %201 : vector<1x8x128xf32> to vector<8x128xf32>
    %c0_114 = arith.constant 0 : index
    %c0_115 = arith.constant 0 : index
    %c0_116 = arith.constant 0 : index
    %203 = vector.load %arg4[%c0_114, %c0_115, %c0_116] : memref<2x32x128xf32, #tpu.memory_space<vmem>>, vector<1x32x128xf32>
    %204 = vector.shape_cast %203 : vector<1x32x128xf32> to vector<32x128xf32>
    %cst_117 = arith.constant dense<0.000000e+00> : vector<8x128xf32>
    %205 = tpu.matmul %197, %204, %cst_117 {dimension_numbers = #tpu.dot_dimension_numbers<[1], [0], [0], [1], [0, 0, 1, 1], [], []>} : vector<8x32xf32>, vector<32x128xf32>, vector<8x128xf32> -> vector<8x128xf32>
    %206 = arith.addf %202, %205 : vector<8x128xf32>
    %207 = vector.extract_strided_slice %206 {offsets = [0, 0], sizes = [8, 32], strides = [1, 1]} : vector<8x128xf32> to vector<8x32xf32>
    %208 = arith.negf %207 : vector<8x32xf32>
    %209 = math.exp %208 : vector<8x32xf32>
    %cst_118 = arith.constant 1.000000e+00 : f32
    %210 = vector.broadcast %cst_118 : f32 to vector<8x32xf32>
    %211 = arith.addf %210, %209 : vector<8x32xf32>
    %212 = arith.divf %210, %211 : vector<8x32xf32>
    %213 = vector.extract_strided_slice %206 {offsets = [0, 32], sizes = [8, 32], strides = [1, 1]} : vector<8x128xf32> to vector<8x32xf32>
    %214 = arith.negf %213 : vector<8x32xf32>
    %215 = math.exp %214 : vector<8x32xf32>
    %cst_119 = arith.constant 1.000000e+00 : f32
    %216 = vector.broadcast %cst_119 : f32 to vector<8x32xf32>
    %217 = arith.addf %216, %215 : vector<8x32xf32>
    %218 = arith.divf %216, %217 : vector<8x32xf32>
    %219 = vector.extract_strided_slice %206 {offsets = [0, 64], sizes = [8, 32], strides = [1, 1]} : vector<8x128xf32> to vector<8x32xf32>
    %220 = math.tanh %219 : vector<8x32xf32>
    %221 = vector.extract_strided_slice %206 {offsets = [0, 96], sizes = [8, 32], strides = [1, 1]} : vector<8x128xf32> to vector<8x32xf32>
    %222 = arith.negf %221 : vector<8x32xf32>
    %223 = math.exp %222 : vector<8x32xf32>
    %cst_120 = arith.constant 1.000000e+00 : f32
    %224 = vector.broadcast %cst_120 : f32 to vector<8x32xf32>
    %225 = arith.addf %224, %223 : vector<8x32xf32>
    %226 = arith.divf %224, %225 : vector<8x32xf32>
    %227 = arith.mulf %218, %199 : vector<8x32xf32>
    %228 = arith.mulf %212, %220 : vector<8x32xf32>
    %229 = arith.addf %227, %228 : vector<8x32xf32>
    %230 = math.tanh %229 : vector<8x32xf32>
    %231 = arith.mulf %226, %230 : vector<8x32xf32>
    %c0_121 = arith.constant 0 : index
    %c0_122 = arith.constant 0 : index
    %c0_123 = arith.constant 0 : index
    %232 = vector.load %arg9[%c0_121, %c0_122, %c0_123] : memref<2x8x32xf32, #tpu.memory_space<vmem>>, vector<1x8x32xf32>
    %233 = vector.shape_cast %232 : vector<1x8x32xf32> to vector<8x32xf32>
    %234 = vector.shape_cast %231 : vector<8x32xf32> to vector<1x8x32xf32>
    tpu.vector_store %arg9[%c0_121, %c0_122, %c0_123], %234 {strides = array<i32>} : memref<2x8x32xf32, #tpu.memory_space<vmem>>, vector<1x8x32xf32>,
    %c0_124 = arith.constant 0 : index
    %c0_125 = arith.constant 0 : index
    %c0_126 = arith.constant 0 : index
    %235 = vector.load %arg10[%c0_124, %c0_125, %c0_126] : memref<2x8x32xf32, #tpu.memory_space<vmem>>, vector<1x8x32xf32>
    %236 = vector.shape_cast %235 : vector<1x8x32xf32> to vector<8x32xf32>
    %237 = vector.shape_cast %229 : vector<8x32xf32> to vector<1x8x32xf32>
    tpu.vector_store %arg10[%c0_124, %c0_125, %c0_126], %237 {strides = array<i32>} : memref<2x8x32xf32, #tpu.memory_space<vmem>>, vector<1x8x32xf32>,
    %c1_127 = arith.constant 1 : index
    %c0_128 = arith.constant 0 : index
    %c0_129 = arith.constant 0 : index
    %238 = vector.load %arg9[%c1_127, %c0_128, %c0_129] : memref<2x8x32xf32, #tpu.memory_space<vmem>>, vector<1x8x32xf32>
    %239 = vector.shape_cast %238 : vector<1x8x32xf32> to vector<8x32xf32>
    %c1_130 = arith.constant 1 : index
    %c0_131 = arith.constant 0 : index
    %c0_132 = arith.constant 0 : index
    %240 = vector.load %arg10[%c1_130, %c0_131, %c0_132] : memref<2x8x32xf32, #tpu.memory_space<vmem>>, vector<1x8x32xf32>
    %241 = vector.shape_cast %240 : vector<1x8x32xf32> to vector<8x32xf32>
    %c0_133 = arith.constant 0 : index
    %c0_134 = arith.constant 0 : index
    %c0_135 = arith.constant 0 : index
    %242 = vector.load %arg5[%c0_133, %c0_134, %c0_135] : memref<1x32x128xf32, #tpu.memory_space<vmem>>, vector<1x32x128xf32>
    %243 = vector.shape_cast %242 : vector<1x32x128xf32> to vector<32x128xf32>
    %cst_136 = arith.constant dense<0.000000e+00> : vector<8x128xf32>
    %244 = tpu.matmul %231, %243, %cst_136 {dimension_numbers = #tpu.dot_dimension_numbers<[1], [0], [0], [1], [0, 0, 1, 1], [], []>} : vector<8x32xf32>, vector<32x128xf32>, vector<8x128xf32> -> vector<8x128xf32>
    %c1_137 = arith.constant 1 : index
    %c0_138 = arith.constant 0 : index
    %c0_139 = arith.constant 0 : index
    %245 = vector.load %arg4[%c1_137, %c0_138, %c0_139] : memref<2x32x128xf32, #tpu.memory_space<vmem>>, vector<1x32x128xf32>
    %246 = vector.shape_cast %245 : vector<1x32x128xf32> to vector<32x128xf32>
    %cst_140 = arith.constant dense<0.000000e+00> : vector<8x128xf32>
    %247 = tpu.matmul %239, %246, %cst_140 {dimension_numbers = #tpu.dot_dimension_numbers<[1], [0], [0], [1], [0, 0, 1, 1], [], []>} : vector<8x32xf32>, vector<32x128xf32>, vector<8x128xf32> -> vector<8x128xf32>
    %248 = arith.addf %244, %247 : vector<8x128xf32>
    %249 = vector.broadcast %15 : vector<1x128xf32> to vector<8x128xf32>
    %250 = arith.addf %248, %249 : vector<8x128xf32>
    %251 = vector.extract_strided_slice %250 {offsets = [0, 0], sizes = [8, 32], strides = [1, 1]} : vector<8x128xf32> to vector<8x32xf32>
    %252 = arith.negf %251 : vector<8x32xf32>
    %253 = math.exp %252 : vector<8x32xf32>
    %cst_141 = arith.constant 1.000000e+00 : f32
    %254 = vector.broadcast %cst_141 : f32 to vector<8x32xf32>
    %255 = arith.addf %254, %253 : vector<8x32xf32>
    %256 = arith.divf %254, %255 : vector<8x32xf32>
    %257 = vector.extract_strided_slice %250 {offsets = [0, 32], sizes = [8, 32], strides = [1, 1]} : vector<8x128xf32> to vector<8x32xf32>
    %258 = arith.negf %257 : vector<8x32xf32>
    %259 = math.exp %258 : vector<8x32xf32>
    %cst_142 = arith.constant 1.000000e+00 : f32
    %260 = vector.broadcast %cst_142 : f32 to vector<8x32xf32>
    %261 = arith.addf %260, %259 : vector<8x32xf32>
    %262 = arith.divf %260, %261 : vector<8x32xf32>
    %263 = vector.extract_strided_slice %250 {offsets = [0, 64], sizes = [8, 32], strides = [1, 1]} : vector<8x128xf32> to vector<8x32xf32>
    %264 = math.tanh %263 : vector<8x32xf32>
    %265 = vector.extract_strided_slice %250 {offsets = [0, 96], sizes = [8, 32], strides = [1, 1]} : vector<8x128xf32> to vector<8x32xf32>
    %266 = arith.negf %265 : vector<8x32xf32>
    %267 = math.exp %266 : vector<8x32xf32>
    %cst_143 = arith.constant 1.000000e+00 : f32
    %268 = vector.broadcast %cst_143 : f32 to vector<8x32xf32>
    %269 = arith.addf %268, %267 : vector<8x32xf32>
    %270 = arith.divf %268, %269 : vector<8x32xf32>
    %271 = arith.mulf %262, %241 : vector<8x32xf32>
    %272 = arith.mulf %256, %264 : vector<8x32xf32>
    %273 = arith.addf %271, %272 : vector<8x32xf32>
    %274 = math.tanh %273 : vector<8x32xf32>
    %275 = arith.mulf %270, %274 : vector<8x32xf32>
    %c1_144 = arith.constant 1 : index
    %c0_145 = arith.constant 0 : index
    %c0_146 = arith.constant 0 : index
    %276 = vector.load %arg9[%c1_144, %c0_145, %c0_146] : memref<2x8x32xf32, #tpu.memory_space<vmem>>, vector<1x8x32xf32>
    %277 = vector.shape_cast %276 : vector<1x8x32xf32> to vector<8x32xf32>
    %278 = vector.shape_cast %275 : vector<8x32xf32> to vector<1x8x32xf32>
    tpu.vector_store %arg9[%c1_144, %c0_145, %c0_146], %278 {strides = array<i32>} : memref<2x8x32xf32, #tpu.memory_space<vmem>>, vector<1x8x32xf32>,
    %c1_147 = arith.constant 1 : index
    %c0_148 = arith.constant 0 : index
    %c0_149 = arith.constant 0 : index
    %279 = vector.load %arg10[%c1_147, %c0_148, %c0_149] : memref<2x8x32xf32, #tpu.memory_space<vmem>>, vector<1x8x32xf32>
    %280 = vector.shape_cast %279 : vector<1x8x32xf32> to vector<8x32xf32>
    %281 = vector.shape_cast %273 : vector<8x32xf32> to vector<1x8x32xf32>
    tpu.vector_store %arg10[%c1_147, %c0_148, %c0_149], %281 {strides = array<i32>} : memref<2x8x32xf32, #tpu.memory_space<vmem>>, vector<1x8x32xf32>,
    %282 = arith.index_cast %c2_i32 : i32 to index
    %c0_150 = arith.constant 0 : index
    %c0_151 = arith.constant 0 : index
    %283 = vector.load %arg7[%282, %c0_150, %c0_151] : memref<4x8x32xf32, #tpu.memory_space<vmem>>, vector<1x8x32xf32>
    %284 = vector.shape_cast %283 : vector<1x8x32xf32> to vector<8x32xf32>
    %285 = vector.shape_cast %275 : vector<8x32xf32> to vector<1x8x32xf32>
    tpu.vector_store %arg7[%282, %c0_150, %c0_151], %285 {strides = array<i32>} : memref<4x8x32xf32, #tpu.memory_space<vmem>>, vector<1x8x32xf32>,
    %c3_i32 = arith.constant 3 : i32
    %c0_152 = arith.constant 0 : index
    %c0_153 = arith.constant 0 : index
    %c0_154 = arith.constant 0 : index
    %286 = vector.load %arg9[%c0_152, %c0_153, %c0_154] : memref<2x8x32xf32, #tpu.memory_space<vmem>>, vector<1x8x32xf32>
    %287 = vector.shape_cast %286 : vector<1x8x32xf32> to vector<8x32xf32>
    %c0_155 = arith.constant 0 : index
    %c0_156 = arith.constant 0 : index
    %c0_157 = arith.constant 0 : index
    %288 = vector.load %arg10[%c0_155, %c0_156, %c0_157] : memref<2x8x32xf32, #tpu.memory_space<vmem>>, vector<1x8x32xf32>
    %289 = vector.shape_cast %288 : vector<1x8x32xf32> to vector<8x32xf32>
    %290 = arith.index_cast %c3_i32 : i32 to index
    %c0_158 = arith.constant 0 : index
    %c0_159 = arith.constant 0 : index
    %291 = vector.load %arg8[%290, %c0_158, %c0_159] : memref<4x8x128xf32, #tpu.memory_space<vmem>>, vector<1x8x128xf32>
    %292 = vector.shape_cast %291 : vector<1x8x128xf32> to vector<8x128xf32>
    %c0_160 = arith.constant 0 : index
    %c0_161 = arith.constant 0 : index
    %c0_162 = arith.constant 0 : index
    %293 = vector.load %arg4[%c0_160, %c0_161, %c0_162] : memref<2x32x128xf32, #tpu.memory_space<vmem>>, vector<1x32x128xf32>
    %294 = vector.shape_cast %293 : vector<1x32x128xf32> to vector<32x128xf32>
    %cst_163 = arith.constant dense<0.000000e+00> : vector<8x128xf32>
    %295 = tpu.matmul %287, %294, %cst_163 {dimension_numbers = #tpu.dot_dimension_numbers<[1], [0], [0], [1], [0, 0, 1, 1], [], []>} : vector<8x32xf32>, vector<32x128xf32>, vector<8x128xf32> -> vector<8x128xf32>
    %296 = arith.addf %292, %295 : vector<8x128xf32>
    %297 = vector.extract_strided_slice %296 {offsets = [0, 0], sizes = [8, 32], strides = [1, 1]} : vector<8x128xf32> to vector<8x32xf32>
    %298 = arith.negf %297 : vector<8x32xf32>
    %299 = math.exp %298 : vector<8x32xf32>
    %cst_164 = arith.constant 1.000000e+00 : f32
    %300 = vector.broadcast %cst_164 : f32 to vector<8x32xf32>
    %301 = arith.addf %300, %299 : vector<8x32xf32>
    %302 = arith.divf %300, %301 : vector<8x32xf32>
    %303 = vector.extract_strided_slice %296 {offsets = [0, 32], sizes = [8, 32], strides = [1, 1]} : vector<8x128xf32> to vector<8x32xf32>
    %304 = arith.negf %303 : vector<8x32xf32>
    %305 = math.exp %304 : vector<8x32xf32>
    %cst_165 = arith.constant 1.000000e+00 : f32
    %306 = vector.broadcast %cst_165 : f32 to vector<8x32xf32>
    %307 = arith.addf %306, %305 : vector<8x32xf32>
    %308 = arith.divf %306, %307 : vector<8x32xf32>
    %309 = vector.extract_strided_slice %296 {offsets = [0, 64], sizes = [8, 32], strides = [1, 1]} : vector<8x128xf32> to vector<8x32xf32>
    %310 = math.tanh %309 : vector<8x32xf32>
    %311 = vector.extract_strided_slice %296 {offsets = [0, 96], sizes = [8, 32], strides = [1, 1]} : vector<8x128xf32> to vector<8x32xf32>
    %312 = arith.negf %311 : vector<8x32xf32>
    %313 = math.exp %312 : vector<8x32xf32>
    %cst_166 = arith.constant 1.000000e+00 : f32
    %314 = vector.broadcast %cst_166 : f32 to vector<8x32xf32>
    %315 = arith.addf %314, %313 : vector<8x32xf32>
    %316 = arith.divf %314, %315 : vector<8x32xf32>
    %317 = arith.mulf %308, %289 : vector<8x32xf32>
    %318 = arith.mulf %302, %310 : vector<8x32xf32>
    %319 = arith.addf %317, %318 : vector<8x32xf32>
    %320 = math.tanh %319 : vector<8x32xf32>
    %321 = arith.mulf %316, %320 : vector<8x32xf32>
    %c0_167 = arith.constant 0 : index
    %c0_168 = arith.constant 0 : index
    %c0_169 = arith.constant 0 : index
    %322 = vector.load %arg9[%c0_167, %c0_168, %c0_169] : memref<2x8x32xf32, #tpu.memory_space<vmem>>, vector<1x8x32xf32>
    %323 = vector.shape_cast %322 : vector<1x8x32xf32> to vector<8x32xf32>
    %324 = vector.shape_cast %321 : vector<8x32xf32> to vector<1x8x32xf32>
    tpu.vector_store %arg9[%c0_167, %c0_168, %c0_169], %324 {strides = array<i32>} : memref<2x8x32xf32, #tpu.memory_space<vmem>>, vector<1x8x32xf32>,
    %c0_170 = arith.constant 0 : index
    %c0_171 = arith.constant 0 : index
    %c0_172 = arith.constant 0 : index
    %325 = vector.load %arg10[%c0_170, %c0_171, %c0_172] : memref<2x8x32xf32, #tpu.memory_space<vmem>>, vector<1x8x32xf32>
    %326 = vector.shape_cast %325 : vector<1x8x32xf32> to vector<8x32xf32>
    %327 = vector.shape_cast %319 : vector<8x32xf32> to vector<1x8x32xf32>
    tpu.vector_store %arg10[%c0_170, %c0_171, %c0_172], %327 {strides = array<i32>} : memref<2x8x32xf32, #tpu.memory_space<vmem>>, vector<1x8x32xf32>,
    %c1_173 = arith.constant 1 : index
    %c0_174 = arith.constant 0 : index
    %c0_175 = arith.constant 0 : index
    %328 = vector.load %arg9[%c1_173, %c0_174, %c0_175] : memref<2x8x32xf32, #tpu.memory_space<vmem>>, vector<1x8x32xf32>
    %329 = vector.shape_cast %328 : vector<1x8x32xf32> to vector<8x32xf32>
    %c1_176 = arith.constant 1 : index
    %c0_177 = arith.constant 0 : index
    %c0_178 = arith.constant 0 : index
    %330 = vector.load %arg10[%c1_176, %c0_177, %c0_178] : memref<2x8x32xf32, #tpu.memory_space<vmem>>, vector<1x8x32xf32>
    %331 = vector.shape_cast %330 : vector<1x8x32xf32> to vector<8x32xf32>
    %c0_179 = arith.constant 0 : index
    %c0_180 = arith.constant 0 : index
    %c0_181 = arith.constant 0 : index
    %332 = vector.load %arg5[%c0_179, %c0_180, %c0_181] : memref<1x32x128xf32, #tpu.memory_space<vmem>>, vector<1x32x128xf32>
    %333 = vector.shape_cast %332 : vector<1x32x128xf32> to vector<32x128xf32>
    %cst_182 = arith.constant dense<0.000000e+00> : vector<8x128xf32>
    %334 = tpu.matmul %321, %333, %cst_182 {dimension_numbers = #tpu.dot_dimension_numbers<[1], [0], [0], [1], [0, 0, 1, 1], [], []>} : vector<8x32xf32>, vector<32x128xf32>, vector<8x128xf32> -> vector<8x128xf32>
    %c1_183 = arith.constant 1 : index
    %c0_184 = arith.constant 0 : index
    %c0_185 = arith.constant 0 : index
    %335 = vector.load %arg4[%c1_183, %c0_184, %c0_185] : memref<2x32x128xf32, #tpu.memory_space<vmem>>, vector<1x32x128xf32>
    %336 = vector.shape_cast %335 : vector<1x32x128xf32> to vector<32x128xf32>
    %cst_186 = arith.constant dense<0.000000e+00> : vector<8x128xf32>
    %337 = tpu.matmul %329, %336, %cst_186 {dimension_numbers = #tpu.dot_dimension_numbers<[1], [0], [0], [1], [0, 0, 1, 1], [], []>} : vector<8x32xf32>, vector<32x128xf32>, vector<8x128xf32> -> vector<8x128xf32>
    %338 = arith.addf %334, %337 : vector<8x128xf32>
    %339 = vector.broadcast %15 : vector<1x128xf32> to vector<8x128xf32>
    %340 = arith.addf %338, %339 : vector<8x128xf32>
    %341 = vector.extract_strided_slice %340 {offsets = [0, 0], sizes = [8, 32], strides = [1, 1]} : vector<8x128xf32> to vector<8x32xf32>
    %342 = arith.negf %341 : vector<8x32xf32>
    %343 = math.exp %342 : vector<8x32xf32>
    %cst_187 = arith.constant 1.000000e+00 : f32
    %344 = vector.broadcast %cst_187 : f32 to vector<8x32xf32>
    %345 = arith.addf %344, %343 : vector<8x32xf32>
    %346 = arith.divf %344, %345 : vector<8x32xf32>
    %347 = vector.extract_strided_slice %340 {offsets = [0, 32], sizes = [8, 32], strides = [1, 1]} : vector<8x128xf32> to vector<8x32xf32>
    %348 = arith.negf %347 : vector<8x32xf32>
    %349 = math.exp %348 : vector<8x32xf32>
    %cst_188 = arith.constant 1.000000e+00 : f32
    %350 = vector.broadcast %cst_188 : f32 to vector<8x32xf32>
    %351 = arith.addf %350, %349 : vector<8x32xf32>
    %352 = arith.divf %350, %351 : vector<8x32xf32>
    %353 = vector.extract_strided_slice %340 {offsets = [0, 64], sizes = [8, 32], strides = [1, 1]} : vector<8x128xf32> to vector<8x32xf32>
    %354 = math.tanh %353 : vector<8x32xf32>
    %355 = vector.extract_strided_slice %340 {offsets = [0, 96], sizes = [8, 32], strides = [1, 1]} : vector<8x128xf32> to vector<8x32xf32>
    %356 = arith.negf %355 : vector<8x32xf32>
    %357 = math.exp %356 : vector<8x32xf32>
    %cst_189 = arith.constant 1.000000e+00 : f32
    %358 = vector.broadcast %cst_189 : f32 to vector<8x32xf32>
    %359 = arith.addf %358, %357 : vector<8x32xf32>
    %360 = arith.divf %358, %359 : vector<8x32xf32>
    %361 = arith.mulf %352, %331 : vector<8x32xf32>
    %362 = arith.mulf %346, %354 : vector<8x32xf32>
    %363 = arith.addf %361, %362 : vector<8x32xf32>
    %364 = math.tanh %363 : vector<8x32xf32>
    %365 = arith.mulf %360, %364 : vector<8x32xf32>
    %c1_190 = arith.constant 1 : index
    %c0_191 = arith.constant 0 : index
    %c0_192 = arith.constant 0 : index
    %366 = vector.load %arg9[%c1_190, %c0_191, %c0_192] : memref<2x8x32xf32, #tpu.memory_space<vmem>>, vector<1x8x32xf32>
    %367 = vector.shape_cast %366 : vector<1x8x32xf32> to vector<8x32xf32>
    %368 = vector.shape_cast %365 : vector<8x32xf32> to vector<1x8x32xf32>
    tpu.vector_store %arg9[%c1_190, %c0_191, %c0_192], %368 {strides = array<i32>} : memref<2x8x32xf32, #tpu.memory_space<vmem>>, vector<1x8x32xf32>,
    %c1_193 = arith.constant 1 : index
    %c0_194 = arith.constant 0 : index
    %c0_195 = arith.constant 0 : index
    %369 = vector.load %arg10[%c1_193, %c0_194, %c0_195] : memref<2x8x32xf32, #tpu.memory_space<vmem>>, vector<1x8x32xf32>
    %370 = vector.shape_cast %369 : vector<1x8x32xf32> to vector<8x32xf32>
    %371 = vector.shape_cast %363 : vector<8x32xf32> to vector<1x8x32xf32>
    tpu.vector_store %arg10[%c1_193, %c0_194, %c0_195], %371 {strides = array<i32>} : memref<2x8x32xf32, #tpu.memory_space<vmem>>, vector<1x8x32xf32>,
    %372 = arith.index_cast %c3_i32 : i32 to index
    %c0_196 = arith.constant 0 : index
    %c0_197 = arith.constant 0 : index
    %373 = vector.load %arg7[%372, %c0_196, %c0_197] : memref<4x8x32xf32, #tpu.memory_space<vmem>>, vector<1x8x32xf32>
    %374 = vector.shape_cast %373 : vector<1x8x32xf32> to vector<8x32xf32>
    %375 = vector.shape_cast %365 : vector<8x32xf32> to vector<1x8x32xf32>
    tpu.vector_store %arg7[%372, %c0_196, %c0_197], %375 {strides = array<i32>} : memref<4x8x32xf32, #tpu.memory_space<vmem>>, vector<1x8x32xf32>,
    %c4_i32 = arith.constant 4 : i32
    return
  }
  func.func @transform_0(%arg0: i32, %arg1: i32) -> (i32, i32, i32) {
    %c0_i32 = arith.constant 0 : i32
    %c0_i32_0 = arith.constant 0 : i32
    return %arg1, %arg0, %c0_i32 : i32, i32, i32
  }
  func.func @transform_1(%arg0: i32, %arg1: i32) -> (i32, i32) {
    %c0_i32 = arith.constant 0 : i32
    %c0_i32_0 = arith.constant 0 : i32
    %c0_i32_1 = arith.constant 0 : i32
    return %c0_i32, %c0_i32_0 : i32, i32
  }
  func.func @transform_2(%arg0: i32, %arg1: i32) -> (i32, i32, i32) {
    %c0_i32 = arith.constant 0 : i32
    %c0_i32_0 = arith.constant 0 : i32
    %c0_i32_1 = arith.constant 0 : i32
    %c0_i32_2 = arith.constant 0 : i32
    return %c0_i32, %c0_i32_0, %c0_i32_1 : i32, i32, i32
  }
  func.func @transform_3(%arg0: i32, %arg1: i32) -> (i32, i32, i32) {
    %c0_i32 = arith.constant 0 : i32
    %c0_i32_0 = arith.constant 0 : i32
    %c0_i32_1 = arith.constant 0 : i32
    %c0_i32_2 = arith.constant 0 : i32
    return %c0_i32, %c0_i32_0, %c0_i32_1 : i32, i32, i32
  }
  func.func @transform_4(%arg0: i32, %arg1: i32) -> (i32, i32, i32) {
    %c0_i32 = arith.constant 0 : i32
    %c0_i32_0 = arith.constant 0 : i32
    %c0_i32_1 = arith.constant 0 : i32
    %c0_i32_2 = arith.constant 0 : i32
    return %c0_i32, %c0_i32_0, %c0_i32_1 : i32, i32, i32
  }
  func.func @transform_5(%arg0: i32, %arg1: i32) -> (i32, i32, i32) {
    %c0_i32 = arith.constant 0 : i32
    %c0_i32_0 = arith.constant 0 : i32
    return %arg1, %arg0, %c0_i32 : i32, i32, i32
  }
}

</mosaic_0001>

<bundles_post_ra>
// kernel: tpu_custom_call.1
= control target key start
LH: loop header
LB: loop body
LE: loop exit
PB: predicated region body
PF: predicated region fallthrough
CT: control target
= control target key end

     0   :  { %s3162_s0 = inlined_call_operand.hbm [shape: f32[8,16,16], index: 0, kind: input, shape index: {}]   ;;  %s3163_s1 = inlined_call_operand.hbm [shape: f32[16,128], index: 1, kind: input, shape index: {}]   ;;  %s3164_s2 = inlined_call_operand.hbm [shape: f32[2,32,128], index: 2, kind: input, shape index: {}]   ;;  %s3165_s3 = inlined_call_operand.hbm [shape: f32[1,32,128], index: 3, kind: input, shape index: {}]   ;;  %s3166_s4 = inlined_call_operand.vmem [shape: f32[2,1,128], index: 4, kind: input, shape index: {}]   ;;  %s3167_s5 = inlined_call_operand.hbm [shape: f32[8,16,32], index: 5, kind: output, shape index: {}]  }
   0x1   :  { %3181 = sst [smem:[#allocation23_spill]] %s3167_s5 }
   0x2   :  { %10 = vsyncpa [#allocation6], 0 }
   0x3   :  { %12 = vsyncpa [#allocation6 + $0x1], 0 }
   0x4   :  { %13 = vsyncpa [#allocation9], 0 }
   0x5   :  { %14 = vsyncpa [#allocation12], 0 }
   0x6   :  { %15 = vsyncpa [#allocation7], 0 }
   0x7   :  { %17 = vsyncpa [#allocation7 + $0x1], 0  ;;  %s2638_s18 = smov 0   ;;  %s2640_s19 = smov 0  }
   0x8   :  { %s2642_s20 = smov 0   ;;  %s2644_s21 = smov 0  }
   0x9   :  { %s2646_s22 = smov 0   ;;  %s2648_s23 = smov 0  }
   0xa   :  { %s2650_s24 = smov 0   ;;  %s2652_s25 = smov 0  }
   0xb LB: > { %3182 = sst [smem:[#allocation18_spill]] %s2560_s18  ;;  %s1842_s26 = sadd.s32 4294967295, %s2588_s25   ;;  %s2588_s25 = sphi %s2652_s25, %s23_s25   ;;  %s2584_s24 = sphi %s2650_s24, %s3216_s24   ;;  %s2580_s23 = sphi %s2648_s23, %s3215_s23   ;;  %s2576_s22 = sphi %s2646_s22, %s3214_s22   ;;  %s2572_s21 = sphi %s2644_s21, %s3213_s21   ;;  %s2568_s20 = sphi %s2642_s20, %s3212_s20   ;;  %s2564_s19 = sphi %s2640_s19, %s3211_s19   ;;  %s2560_s18 = sphi %s2638_s18, %s3210_s18  }
   0xc   : > { %3183 = sst [smem:[#allocation19_spill]] %s2576_s22  ;;  %s1843_s27 = sadd.s32 4294967294, %s2588_s25  }
   0xd   : > { %3184 = sst [smem:[#allocation20_spill]] %s2588_s25  ;;  %p51_p0 = scmp.ne.s32.totalorder %s2568_s20, %s2564_s19 }
   0xe   : > { %p52_p1 = scmp.eq.s32.totalorder %s2588_s25, 0  ;;  %p57_p2 = scmp.ne.s32.totalorder %s2564_s19, %s2560_s18 }
   0xf   : > { %p2686_p3 = scmp.eq.s32.totalorder %s1842_s26, 0  ;;  %p167_p4 = scmp.eq.s32.totalorder %s1842_s26, 3 }
  0x10   : > { %p2690_p5 = por %p52_p1, %p51_p0  ;;  %p173_p6 = scmp.eq.s32.totalorder %s1843_s27, 3 }
  0x11   : > { %s3185_s29 = scalar_select %p2686_p3, 1, 0 }
  0x12   : > { %p2696_p7 = por %p2686_p3, %p57_p2  ;;  %p2700_p8 = por %p167_p4, %p51_p0 }
  0x13   : > { %p2704_p9 = por %p173_p6, %p57_p2  ;;  %p1844_p10 = scmp.ge.s32.totalorder %s2588_s25, 1 }
  0x14   : > { %s3187_s6 = scalar_select %p2696_p7, 1, 0 }
  0x15   : > { %s3188_s7 = scalar_select %p2700_p8, 1, 0 }
  0x16   : > { %s3190_s8 = scalar_select %p2704_p9, 1, 0 }
  0x17   : > { %3189 = sst [smem:[#allocation21_spill]] %s3188_s7  ;;  %p180_p11 = scmp.lt.s32.totalorder %s2588_s25, 5 }
  0x18   : > { %3191 = sst [smem:[#allocation22_spill]] %s3190_s8  ;;  %s2590_s10 = smov [#allocation8]  }
  0x19   : > { %p2710_p12 = pnand %p1844_p10, %p180_p11  ;;  %s192_s11 = sshll.u32 %s2590_s10, 4  ;;  %s2714_s11 = int_to_ptr.vmem [resolvable:$true] %s192_s11 }
  0x1a   : > { %p2219_p0 = scmp.lt.s32.totalorder %s2588_s25, 4  ;;  %s2591_s13 = smov [#allocation10]  }
  0x1b   : > { %s3192_s9 = scalar_select %p2710_p12, 1, 0 }
  0x1c   : > { %p2198_p13 = pneg %p2710_p12  ;;  %s205_s14 = sshll.u32 %s2591_s13, 4  ;;  %s2731_s14 = int_to_ptr.vmem [resolvable:$true] %s205_s14 }
  0x1d   : > { %p2727_p2 = pnand %p2219_p0, %p2690_p5  ;;  %s2368_s26 = scalar_lea.hbm %s3163_s1, 256 }
  0x1e   : > { %p2721_p1 = pnand %p2198_p13, %p2686_p3  ;;  %p2369_p4 = scmp.ne.s32.totalorder %s3163_s1, %s2368_s26 }
  0x1f   : > { %s3194_s15 = scalar_select %p2727_p2, 1, 0 }
  0x20   : > { %p2741_p6 = pneg %p2721_p1  ;;  %p2375_p11 = scmp.lt.u32.totalorder %s2368_s26, %s3163_s1 }
  0x22   : > { %p2371_p5 = pnand %p2741_p6, %p2369_p4 }
  0x24   : > { %p2372_p10 = pneg %p2371_p5 }
  0x26   : > { %p2377_p13 = pnand %p2375_p11, %p2372_p10 }
  0x28   : > { %2380 = shalt.err (!%p2377_p13)
}
  0x29   : > { %s2381_s16 = scalar_lea.vmem %s2714_s11, 256  ;;  %p2389_p3 = scmp.lt.s32.totalorder %s2714_s11, %s2714_s11 }
  0x2a   : > { %p2382_p0 = scmp.ne.s32.totalorder %s2714_s11, %s2381_s16  ;;  %p2390_p7 = scmp.lt.s32.totalorder %s2381_s16, %s2381_s16 }
  0x2c   : > { %p2384_p9 = pnand %p2382_p0, %p2741_p6  ;;  %p2391_p4 = por %p2390_p7, %p2389_p3 }
  0x2e   : > { %p2385_p8 = pneg %p2384_p9 }
  0x30   : > { %p2392_p5 = pnand %p2391_p4, %p2385_p8 }
  0x32   : > { %2395 = shalt.err (!%p2392_p5)
}
  0x33   : > { %s2592_s17 = smov 128   ;;  %s2593_s26 = smov 8  }
  0x34   : > { %2201 = dma.hbm_to_vmem [thread:$0]  (!%p2721_p1), %s3163_s1, 256, %s2714_s11, [#allocation9], %s2592_s17, %s2592_s17, %s2593_s26  }
  0x35   : > { %s2594_s30 = smov [#allocation11]   ;;  %s2396_s18 = scalar_lea.hbm %s3164_s2, 1024 }
  0x36   : > { %s218_s13 = sshll.u32 %s2594_s30, 4  ;;  %p2397_p3 = scmp.ne.s32.totalorder %s3164_s2, %s2396_s18  ;;  %s219_s13 = int_to_ptr.vmem [resolvable:$true] %s218_s13 }
  0x37   : > { %p2403_p9 = scmp.lt.u32.totalorder %s2396_s18, %s3164_s2 }
  0x38   : > { %p2399_p7 = pnand %p2397_p3, %p2741_p6 }
  0x3a   : > { %p2400_p8 = pneg %p2399_p7 }
  0x3c   : > { %p2405_p10 = pnand %p2403_p9, %p2400_p8 }
  0x3e   : > { %2408 = shalt.err (!%p2405_p10)
}
  0x3f   : > { %s2409_s11 = scalar_lea.vmem %s2731_s14, 1024  ;;  %p2417_p4 = scmp.lt.s32.totalorder %s2731_s14, %s2731_s14 }
  0x40   : > { %p2410_p11 = scmp.ne.s32.totalorder %s2731_s14, %s2409_s11  ;;  %p2418_p5 = scmp.lt.s32.totalorder %s2409_s11, %s2409_s11 }
  0x42   : > { %p2412_p13 = pnand %p2410_p11, %p2741_p6  ;;  %p2419_p3 = por %p2418_p5, %p2417_p4 }
  0x44   : > { %p2413_p0 = pneg %p2412_p13 }
  0x46   : > { %p2420_p7 = pnand %p2419_p3, %p2413_p0 }
  0x48   : > { %2423 = shalt.err (!%p2420_p7)
}
  0x49   : > { %2204 = dma.hbm_to_vmem [thread:$0]  (!%p2721_p1), %s3164_s2, 1024, %s2731_s14, [#allocation9], %s2592_s17, %s2592_s17, %s2593_s26  }
  0x4a   : > { %s2424_s7 = scalar_lea.hbm %s3165_s3, 512 }
  0x4b   : > { %p2425_p8 = scmp.ne.s32.totalorder %s3165_s3, %s2424_s7  ;;  %p2431_p11 = scmp.lt.u32.totalorder %s2424_s7, %s3165_s3 }
  0x4d   : > { %p2427_p9 = pnand %p2425_p8, %p2741_p6 }
  0x4f   : > { %p2428_p10 = pneg %p2427_p9 }
  0x51   : > { %p2433_p13 = pnand %p2431_p11, %p2428_p10 }
  0x53   : > { %2436 = shalt.err (!%p2433_p13)
}
  0x54   : > { %s2437_s16 = scalar_lea.vmem %s219_s13, 512  ;;  %p2445_p3 = scmp.lt.s32.totalorder %s219_s13, %s219_s13 }
  0x55   : > { %p2438_p0 = scmp.ne.s32.totalorder %s219_s13, %s2437_s16  ;;  %p2446_p7 = scmp.lt.s32.totalorder %s2437_s16, %s2437_s16 }
  0x57   : > { %p2440_p4 = pnand %p2438_p0, %p2741_p6  ;;  %p2447_p12 = por %p2446_p7, %p2445_p3 }
  0x59   : > { %p2441_p5 = pneg %p2440_p4 }
  0x5b   : > { %p2448_p2 = pnand %p2447_p12, %p2441_p5 }
  0x5d   : > { %2451 = shalt.err (!%p2448_p2)
}
  0x5e   : > { %2207 = dma.hbm_to_vmem [thread:$0]  (!%p2721_p1), %s3165_s3, 512, %s219_s13, [#allocation12], %s2592_s17, %s2592_s17, %s2593_s26  }
  0x5f   : > { %s32_s28 = sadd.s32 1, %s2580_s23  ;;  %s35_s5 = sadd.s32 1, %s2584_s24 }
  0x60   : > { %p33_p12 = scmp.ge.s32.totalorder %s32_s28, 2  ;;  %s235_s18 = sand.u32 1, %s2568_s20  }
  0x61   : > { %s1896_s12 = sshll.u32 %s2580_s23, 3  ;;  %s1849_s25 = sshll.u32 %s235_s18, 5 }
  0x62   : > { %s3218_s28 = smov (%p33_p12, %s32_s28), 0  ;;  %s3220_s5 = smov (!%p33_p12, %s35_s5), %s2584_s24 }
  0x63   : > { %s39_s22 = ssub.s32 %s2580_s23, %s3218_s28  ;;  %p37_p2 = scmp.ge.s32.totalorder %s3220_s5, 2 }
  0x64   : > { %s245_s7 = sadd.s32 %s2584_s24, %s1896_s12  ;;  %s239_s8 = scalar_lea.vmem [#allocation5], %s1849_s25 }
  0x65   : > { %s3222_s5 = smov (%p37_p2, %s3220_s5), 0  ;;  %s1852_s13 = sshll.u32 %s245_s7, 7 }
  0x66   : > { %s248_s27 = sshll.u32 %s239_s8, 4  ;;  %s40_s10 = ssub.s32 %s2584_s24, %s3222_s5  ;;  %s2833_s27 = int_to_ptr.vmem [resolvable:$true] %s248_s27 }
  0x67   : > { %s2829_s14 = scalar_lea.hbm %s3162_s0, %s1852_s13  ;;  %s2831_s11 = sor.u32 %s40_s10, %s39_s22 }
  0x68   : > { %p42_p1 = scmp.eq.s32.totalorder %s2831_s11, 0  ;;  %s2836_s12 = scalar_lea.sflag [#allocation6], %s235_s18 }
  0x69   : > { %s2452_s25 = scalar_lea.hbm %s2829_s14, 512  ;;  %p3196_p8 = scmp.ne.s32.totalorder %s3194_s15, 0 }
  0x6a   : > { %p2453_p6 = scmp.ne.s32.totalorder %s2829_s14, %s2452_s25  ;;  %s2457_s8 = scalar_lea.hbm %s3162_s0, 2048 }
  0x6b   : > { %p2454_p9 = pneg %p3196_p8  ;;  %p2458_p13 = scmp.lt.u32.totalorder %s2829_s14, %s3162_s0 }
  0x6c   : > { %p2459_p0 = scmp.lt.u32.totalorder %s2457_s8, %s2452_s25  ;;  %p2461_p5 = scmp.lt.u32.totalorder %s2452_s25, %s2829_s14 }
  0x6d   : > { %p2455_p10 = pnand %p2454_p9, %p2453_p6 }
  0x6e   : > { %p2460_p4 = por %p2459_p0, %p2458_p13 }
  0x6f   : > { %p2456_p11 = pneg %p2455_p10 }
  0x70   : > { %p2462_p3 = por %p2461_p5, %p2460_p4 }
  0x72   : > { %p2463_p7 = pnand %p2462_p3, %p2456_p11 }
  0x74   : > { %2466 = shalt.err (!%p2463_p7)
}
  0x75   : > { %s2467_s18 = scalar_lea.vmem %s2833_s27, 512  ;;  %s2595_s30 = smov [#allocation5]  }
  0x76   : > { %p2468_p12 = scmp.ne.s32.totalorder %s2833_s27, %s2467_s18  ;;  %s2472_s16 = sshll.u32 %s2595_s30, 4  ;;  %s2473_s16 = int_to_ptr.vmem [resolvable:$false] %s2472_s16 }
  0x77   : > { %s2474_s7 = scalar_lea.vmem %s2473_s16, 1024  ;;  %p2475_p10 = scmp.lt.s32.totalorder %s2833_s27, %s2473_s16 }
  0x78   : > { %p2470_p2 = pnand %p2468_p12, %p2454_p9  ;;  %p2476_p13 = scmp.lt.s32.totalorder %s2474_s7, %s2467_s18 }
  0x7a   : > { %p2471_p6 = pneg %p2470_p2  ;;  %p2477_p0 = por %p2476_p13, %p2475_p10 }
  0x7c   : > { %p2478_p4 = pnand %p2477_p0, %p2471_p6 }
  0x7e   : > { %2481 = shalt.err (!%p2478_p4)
}
  0x7f   : > { %s2596_s25 = smov 256   ;;  %s3197_s13 = sadd.s32 1, %s2568_s20 }
  0x80   : > { %2211 = dma.hbm_to_vmem [thread:$0]  (!%p3196_p8), %s2829_s14, 512, %s2833_s27, %s2836_s12, %s2596_s25, %s2592_s17, %s2593_s26  }
  0x81   : > { %s2871_s8 = scalar_select %p42_p1, %s2568_s20, %s3197_s13  }
  0x82   : > { %p3198_p9 = scmp.ne.s32.totalorder %s3192_s9, 0 }
  0x83   : > { %s2876_s22 = sand.u32 (!%p3198_p9), 1, %s2564_s19   ;;  %p3199_p11 = scmp.ne.s32.totalorder (!%p3198_p9), %s3187_s6, 0 }
  0x84   : > { %260 = sbr.rel (%p3198_p9) target bundleno = 3723 (0xe8b), region = 40  ;;  %s1854_s15 = sshll.u32 (!%p3198_p9), %s2876_s22, 5 }
  0x85   : > { %s263_s10 = scalar_lea.sflag (!%p3198_p9), [#allocation6], %s2876_s22  ;;  %s2880_s18 = scalar_lea.vmem (!%p3198_p9), [#allocation5], %s1854_s15 }
  0x8b   : > { %2543 = dma.done.wait (%p3199_p11), %s263_s10, 512  }
  0x8c   : > { %2545 = vsyncadd (%p3199_p11), %s263_s10, 4294966784  ;;  %p3200_p1 = scmp.ne.s32.totalorder %s3185_s29, 0 }
  0x8e   : > { %2547 = dma.done.wait (%p3200_p1), [#allocation9], 1280  }
  0x8f   : > { %2549 = vsyncadd (%p3200_p1), [#allocation9], 4294966016 }
  0x90   : > { %2551 = dma.done.wait (%p3200_p1), [#allocation12], 512  }
  0x91   : > { %2553 = vsyncadd (%p3200_p1), [#allocation12], 4294966784  ;;  %s2894_s9 = scalar_lea.vmem [#allocation13], %s1854_s15  ;;  %p1859_p8 = scmp.ne.s32.totalorder %s2572_s21, 0 }
  0x92   : > { %vm311_vm0 = vcmask (!%p1859_p8), 261120   ;;  %v2597_v0 = vmov (!%p1859_p8), 0.0  }
  0x93   : > { %310 = sbr.rel (%p1859_p8) target bundleno = 154 (0x9a), region = 60  ;;  %312 = vst.msk [vmem:[#allocation3] sm:$0xff] (!%p1859_p8), %vm311_vm0, %v2597_v0  ;;  %313 = vst.msk [vmem:[#allocation3 + $0x8] sm:$0xff] (!%p1859_p8), %vm311_vm0, %v2597_v0 }
  0x94   : > { %314 = vst.msk [vmem:[#allocation4] sm:$0xff] (!%p1859_p8), %vm311_vm0, %v2597_v0  ;;  %315 = vst.msk [vmem:[#allocation4 + $0x8] sm:$0xff] (!%p1859_p8), %vm311_vm0, %v2597_v0 }
  0x9a PF: > { %v320_v1 = vld [vmem:[#allocation8] sm:$0xff]  ;;  %v321_v2 = vld [vmem:[#allocation8 + $0x8] sm:$0xff]  ;;  %v440_v3 = vld [vmem:[#allocation10] sm:$0xff]  ;;  %vm322_vm1 = vcmask 130048   ;;  %v2598_v4 = vmov 0.0|0.0   ;;  %vm2599_vm2 = vmmov 0  }
  0x9b   : > { %2110 = vmatprep.subr.bf16.mxu1 %v2598_v4  ;;  %v2106_v5 = vpack.c.bf16 %v321_v2, %v320_v1  ;;  %v441_v6 = vld [vmem:[#allocation10 + $0x8] sm:$0xff]  ;;  %v316_v7 = vld [vmem:[%s2880_s18] sm:$0xff]  ;;  %v443_v10 = vld [vmem:[#allocation10 + $0x18] sm:$0xff]  ;;  %v2600_v11 = vmov 0.0   ;;  %vm444_vm3 = vcmask 261120   ;;  %s2601_s17 = smov 64  }
  0x9c   : > { %v2899_v8 = vpack.c.bf16 %v441_v6, %v440_v3  ;;  %1968 = vmatprep.mubr.msk.f32.mxu0 %vm322_vm1, %v316_v7  ;;  %v442_v9 = vld [vmem:[#allocation10 + $0x10] sm:$0xff]  ;;  %1982 = vmatprep.mubr.msk.f32.mxu1 %vm2599_vm2, %v2600_v11  ;;  %v317_v12 = vld [vmem:[%s2880_s18 + $0x8] sm:$0xff]  ;;  %v438_v23 = vld [vmem:[#allocation4] sm:$0xff]  ;;  %s2602_s26 = smov 32   ;;  %s2603_s27 = smov 96  }
  0x9d   : > { %2107 = vmatprep.subr.bf16.mxu0 %v2106_v5  ;;  %v2906_v13 = vpack.c.bf16 %v443_v10, %v442_v9  ;;  %v437_v14 = vld [vmem:[#allocation3] sm:$0xff]  ;;  %v566_v34 = vld [vmem:[#allocation10 + $0x20] sm:$0xff]  ;;  %v567_v35 = vld [vmem:[#allocation10 + $0x28] sm:$0xff]  ;;  %s3201_s12 = sld [smem:[#allocation19_spill]]  ;;  %s3202_s30 = sld [smem:[#allocation21_spill]] }
  0x9e   : > { %2112 = vmatpush3.bf16.msra.mxu1 %v2899_v8  ;;  %2109 = vmatpush3.bf16.msra.mxu0 %v2106_v5  ;;  %v2919_v15 = vld [vmem:[%s3166_s4] ss:$0 sm:$0xff]  ;;  %v561_v36 = vld [vmem:[#allocation11] sm:$0xff]  ;;  %v2927_v37 = vpack.c.bf16 %v567_v35, %v566_v34  ;;  %v562_v38 = vld [vmem:[#allocation11 + $0x8] sm:$0xff]  ;;  %s1897_s16 = sshll.u32 %s2572_s21, 3  ;;  %s1725_s13 = sshll.u32 %s2894_s9, 4  ;;  %s3104_s13 = int_to_ptr.vmem [resolvable:$true] %s1725_s13 }
  0x9f   : > { %2113 = vmatprep.subr.bf16.mxu1 %v2598_v4  ;;  %2116 = vmatprep.subr.bf16.mxu0 %v2598_v4  ;;  %v318_v39 = vld [vmem:[%s2880_s18 + $0x10] sm:$0xff]  ;;  %v319_v40 = vld [vmem:[%s2880_s18 + $0x18] sm:$0xff]  ;;  %v2931_v41 = vpack.c.bf16 %v562_v38, %v561_v36  ;;  %v568_v42 = vld [vmem:[#allocation10 + $0x30] sm:$0xff]  ;;  %s3203_s18 = sld [smem:[#allocation23_spill]]  ;;  %s2482_s21 = scalar_lea.vmem %s3104_s13, 512 }
  0xa0   : > { %v569_v43 = vld [vmem:[#allocation10 + $0x38] sm:$0xff]  ;;  %v563_v44 = vld [vmem:[#allocation11 + $0x10] sm:$0xff]  ;;  %v560_v6 = vld [vmem:[#allocation4 + $0x8] sm:$0xff]  ;;  %p2483_p5 = scmp.ne.s32.totalorder %s3104_s13, %s2482_s21 }
  0xa1   : > { %1969 = vmatmul.mubr.msk.f32.vlgmr.msra.gmra.mrb[0].mxu0 %vm322_vm1, %v317_v12  ;;  %v2935_v45 = vpack.c.bf16 %v569_v43, %v568_v42  ;;  %v564_v46 = vld [vmem:[#allocation11 + $0x18] sm:$0xff]  ;;  %v2982_v59 = vld [vmem:[%s3166_s4 + $0x1] ss:$0 sm:$0xff] }
  0xa2   : > { %2115 = vmatpush3.bf16.msra.mxu1 %v2906_v13  ;;  %1971 = vmatprep.mubr.msk.f32.mxu0 %vm322_vm1, %v318_v39  ;;  %v2939_v47 = vpack.c.bf16 %v564_v46, %v563_v44  ;;  %v558_v48 = vld [vmem:[#allocation3 + $0x8] sm:$0xff] }
  0xa3   : > { %2122 = vmatprep.subr.bf16.mxu1 %v2598_v4  ;;  %2118 = vmatpush3.bf16.msra.mxu0 %v2927_v37  ;;  %s1722_s7 = sadd.s32 %s3201_s12, %s1897_s16  ;;  %p3205_p3 = scmp.ne.s32.totalorder %s3202_s30, 0 }
  0xa4   : > { %2119 = vmatprep.subr.bf16.mxu0 %v2598_v4  ;;  %s1893_s25 = sshll.u32 %s1722_s7, 7 }
  0xa5   : > { %1983 = vmatmul.mubr.msk.f32.vlgmr.msra.gmra.mrb[0].mxu1 %vm444_vm3, %v437_v14  ;;  %1972 = vmatmul.mubr.msk.f32.gmra.mrb[2].mxu0 %vm322_vm1, %v319_v40  ;;  %s3204_s29 = smov %s3203_s18  ;;  %s3102_s6 = scalar_lea.hbm %s3203_s18, %s1893_s25 }
  0xa6   : > { %2004 = vmatprep.mubr.msk.f32.mxu1 %vm2599_vm2, %v2600_v11  ;;  %2124 = vmatpush3.bf16.msra.mxu1 %v2931_v41  ;;  %p2484_p7 = pnand %p2483_p5, %p3205_p3 }
  0xa7   : > { %2125 = vmatprep.subr.bf16.mxu1 %v2598_v4  ;;  %1993 = vmatprep.mubr.msk.f32.mxu0 %vm2599_vm2, %v2600_v11 }
  0xa8   : > { %2121 = vmatpush3.bf16.msra.mxu0 %v2935_v45  ;;  %p2485_p12 = pneg %p2484_p7 }
  0xa9   : > { %2128 = vmatprep.subr.bf16.mxu0 %v2598_v4 }
  0xaa   : > { %2127 = vmatpush3.bf16.msra.mxu1 %v2939_v47 }
  0xab   : > { %2134 = vmatprep.subr.bf16.mxu1 %v2598_v4  ;;  %1994 = vmatmul.mubr.msk.f32.vlgmr.msra.gmra.mrb[4].mxu0 %vm444_vm3, %v558_v48 }
  0xac   : > { %2130 = vmatpush3.bf16.msra.mxu0 %v2899_v8  ;;  %2015 = vmatprep.mubr.msk.f32.mxu0 %vm2599_vm2, %v2600_v11 }
  0xad   : > { %2131 = vmatprep.subr.bf16.mxu0 %v2598_v4 }
  0xb0   : > { %2133 = vmatpush3.bf16.msra.mxu0 %v2906_v13 }
  0xb1   : > { %2140 = vmatprep.subr.bf16.mxu0 %v2598_v4 }
 0x174   : > { %v2921_v16 = vpop.f32.mrb[0].mxu0 }
 0x175   : > { %v401_v17 = vpop.f32.mrb[1].mxu0  ;;  %v428_v0 = vadd.f32 %v2921_v16, %v2919_v15 }
 0x176   : > { %v427_v18 = vadd.f32 %v2919_v15, %v401_v17 }
 0x178   : > { %v514_v19 = vpop.f32.mrb[0].mxu1  ;;  %v2960_v53 = vpop.f32.mrb[2].mxu0 }
 0x179   : > { %v518_v20 = vadd.f32 %v514_v19, %v427_v18  ;;  %v1984_v21 = vpop.f32.mrb[1].mxu1  ;;  %v2962_v54 = vpop.f32.mrb[3].mxu0 }
 0x17b   : > { %2304 = vtanh.f32 %v518_v20  ;;  %v1867_v24 = vmul.f32 -1.442695, %v518_v20 }
 0x17d   : > { %2306 = vpow2.f32 %v1867_v24 }
 0x17e   : > { %v639_v55 = vpop.f32.mrb[4].mxu0 }
 0x17f   : > { %v1995_v56 = vpop.f32.mrb[5].mxu0 }
 0x185   : > { %v2305_v22 = vpop.eup %2304 }
 0x186   : > { %532 = vrot.lane.b32.xlu0 %v2305_v22, %s2601_s17 }
 0x187   : > { %v2307_v25 = vpop.eup %2306 }
 0x188   : > { %v522_v26 = vadd.f32 1.0, %v2307_v25 }
 0x18a   : > { %527 = vrot.lane.b32.xlu0 %v438_v23, %s2602_s26  ;;  %2308 = vrcp.f32 %v522_v26 }
 0x194   : > { %v2309_v27 = vpop.eup %2308 }
 0x1f8   : > { %v533_v28 = vpop.permute.xlu0 %532 }
 0x1f9   : > { %v535_v29 = vmul.f32 %v2309_v27, %v533_v28 }
 0x1fb   : > { %537 = vrot.lane.b32.xlu1 %v535_v29, %s2602_s26 }
 0x1fc   : > { %v528_v30 = vpop.permute.xlu0 %527 }
 0x1fd   : > { %v530_v31 = vmul.f32 %v2309_v27, %v528_v30 }
 0x26d   : > { %v538_v32 = vpop.permute.xlu1 %537 }
 0x26e   : > { %v540_v33 = vadd.f32 %v538_v32, %v530_v31 }
 0x270   : > { %2310 = vtanh.f32 %v540_v33 }
 0x27a   : > { %v2311_v49 = vpop.eup %2310 }
 0x27b   : > { %543 = vrot.lane.b32.xlu1 %v2311_v49, %s2601_s17 }
 0x27f   : > { %553 = vrot.lane.b32.xlu1 %v540_v33, %s2603_s27 }
 0x2ed   : > { %v544_v50 = vpop.permute.xlu1 %543 }
 0x2ee   : > { %v546_v51 = vmul.f32 %v2309_v27, %v544_v50 }
 0x2f0   : > { %548 = vrot.lane.b32.xlu0 %v546_v51, %s2602_s26 }
 0x2f1   : > { %v554_v52 = vpop.permute.xlu1 %553 }
 0x2f2   : > { %556 = vst.msk [vmem:[#allocation4] sm:$0xff] %vm444_vm3, %v554_v52 }
 0x2f9   : > { %v762_v9 = vld [vmem:[#allocation4] sm:$0xff] }
 0x362   : > { %v549_v57 = vpop.permute.xlu0 %548 }
 0x363   : > { %551 = vst.msk [vmem:[#allocation3] sm:$0xff] %vm444_vm3, %v549_v57  ;;  %2005 = vmatmul.mubr.msk.f32.vlgmr.msra.gmra.mrb[2].mxu1 %vm444_vm3, %v549_v57  ;;  %v429_v57 = vadd.f32 %v2919_v15, %v2962_v54 }
 0x364   : > { %2136 = vmatpush3.bf16.msra.mxu1 %v2927_v37  ;;  %2026 = vmatprep.mubr.msk.f32.mxu1 %vm2599_vm2, %v2600_v11 }
 0x365   : > { %2137 = vmatprep.subr.bf16.mxu1 %v2598_v4 }
 0x368   : > { %2139 = vmatpush3.bf16.msra.mxu1 %v2935_v45 }
 0x369   : > { %2146 = vmatprep.subr.bf16.mxu1 %v2598_v4 }
 0x36a   : > { %v761_v58 = vld [vmem:[#allocation3] sm:$0xff] }
 0x36b   : > { %2016 = vmatmul.mubr.msk.f32.vlgmr.msra.gmra.mrb[6].mxu0 %vm444_vm3, %v761_v58 }
 0x36c   : > { %2142 = vmatpush3.bf16.msra.mxu0 %v2931_v41  ;;  %2037 = vmatprep.mubr.msk.f32.mxu0 %vm2599_vm2, %v2600_v11 }
 0x36d   : > { %2143 = vmatprep.subr.bf16.mxu0 %v2598_v4 }
 0x370   : > { %2145 = vmatpush3.bf16.msra.mxu0 %v2939_v47 }
 0x371   : > { %2152 = vmatprep.subr.bf16.mxu0 %v2598_v4 }
 0x436   : > { %v711_v60 = vpop.f32.mrb[2].mxu1 }
 0x437   : > { %v712_v61 = vadd.f32 %v711_v60, %v639_v55  ;;  %v2006_v62 = vpop.f32.mrb[3].mxu1 }
 0x439   : > { %v721_v63 = vadd.f32 %v2982_v59, %v712_v61 }
 0x43b   : > { %2312 = vtanh.f32 %v721_v63  ;;  %v1871_v10 = vmul.f32 -1.442695, %v721_v63 }
 0x43e   : > { %v838_v1 = vpop.f32.mrb[6].mxu0 }
 0x43f   : > { %v842_v2 = vadd.f32 %v838_v1, %v428_v0  ;;  %v2017_v3 = vpop.f32.mrb[7].mxu0 }
 0x441   : > { %2314 = vtanh.f32 %v842_v2  ;;  %v1873_v12 = vmul.f32 -1.442695, %v842_v2 }
 0x442   : > { %2316 = vpow2.f32 %v1871_v10 }
 0x443   : > { %2318 = vpow2.f32 %v1873_v12 }
 0x445   : > { %v2313_v5 = vpop.eup %2312 }
 0x446   : > { %735 = vrot.lane.b32.xlu0 %v2313_v5, %s2601_s17 }
 0x44a   : > { %730 = vrot.lane.b32.xlu0 %v560_v6, %s2602_s26 }
 0x44b   : > { %v2315_v7 = vpop.eup %2314 }
 0x44c   : > { %856 = vrot.lane.b32.xlu1 %v2315_v7, %s2601_s17  ;;  %v2317_v14 = vpop.eup %2316 }
 0x44d   : > { %v725_v16 = vadd.f32 1.0, %v2317_v14  ;;  %v2319_v17 = vpop.eup %2318 }
 0x44e   : > { %851 = vrot.lane.b32.xlu0 %v762_v9, %s2602_s26  ;;  %v846_v18 = vadd.f32 1.0, %v2319_v17 }
 0x44f   : > { %2320 = vrcp.f32 %v725_v16 }
 0x450   : > { %2322 = vrcp.f32 %v846_v18 }
 0x459   : > { %v2321_v19 = vpop.eup %2320 }
 0x45a   : > { %v2323_v22 = vpop.eup %2322 }
 0x4b8   : > { %v736_v20 = vpop.permute.xlu0 %735 }
 0x4b9   : > { %v738_v21 = vmul.f32 %v2321_v19, %v736_v20 }
 0x4bb   : > { %740 = vrot.lane.b32.xlu1 %v738_v21, %s2602_s26 }
 0x4bc   : > { %v731_v25 = vpop.permute.xlu0 %730 }
 0x4bd   : > { %v733_v26 = vmul.f32 %v2321_v19, %v731_v25 }
 0x4be   : > { %v857_v23 = vpop.permute.xlu1 %856 }
 0x4bf   : > { %v859_v24 = vmul.f32 %v2323_v22, %v857_v23 }
 0x4c0   : > { %v852_v29 = vpop.permute.xlu0 %851 }
 0x4c1   : > { %861 = vrot.lane.b32.xlu1 %v859_v24, %s2602_s26  ;;  %v854_v30 = vmul.f32 %v2323_v22, %v852_v29 }
 0x52d   : > { %v741_v27 = vpop.permute.xlu1 %740 }
 0x52e   : > { %v743_v28 = vadd.f32 %v741_v27, %v733_v26 }
 0x530   : > { %2324 = vtanh.f32 %v743_v28 }
 0x533   : > { %v862_v31 = vpop.permute.xlu1 %861 }
 0x534   : > { %v864_v32 = vadd.f32 %v862_v31, %v854_v30 }
 0x536   : > { %2326 = vtanh.f32 %v864_v32 }
 0x53a   : > { %v2325_v33 = vpop.eup %2324 }
 0x53b   : > { %746 = vrot.lane.b32.xlu0 %v2325_v33, %s2601_s17 }
 0x540   : > { %v2327_v34 = vpop.eup %2326 }
 0x541   : > { %867 = vrot.lane.b32.xlu1 %v2327_v34, %s2601_s17 }
 0x5ad   : > { %v747_v35 = vpop.permute.xlu0 %746 }
 0x5ae   : > { %v749_v36 = vmul.f32 %v2321_v19, %v747_v35 }
 0x5b0   : > { %751 = vrot.lane.b32.xlu0 %v749_v36, %s2602_s26 }
 0x5b3   : > { %v868_v38 = vpop.permute.xlu1 %867 }
 0x5b4   : > { %v870_v39 = vmul.f32 %v2323_v22, %v868_v38  ;;  %756 = vrot.lane.b32.xlu0 %v743_v28, %s2603_s27 }
 0x5b6   : > { %872 = vrot.lane.b32.xlu1 %v870_v39, %s2602_s26 }
 0x5ba   : > { %877 = vrot.lane.b32.xlu1 %v864_v32, %s2603_s27 }
 0x622   : > { %v752_v40 = vpop.permute.xlu0 %751 }
 0x623   : > { %754 = vst.msk [vmem:[#allocation3 + $0x8] sm:$0xff] %vm444_vm3, %v752_v40  ;;  %760 = vst.msk [vmem:[%s2894_s9] sm:$0xff] %vm444_vm3, %v752_v40 }
 0x626   : > { %v757_v42 = vpop.permute.xlu0 %756 }
 0x627   : > { %759 = vst.msk [vmem:[#allocation4 + $0x8] sm:$0xff] %vm444_vm3, %v757_v42  ;;  %v430_v42 = vadd.f32 %v2960_v53, %v2919_v15 }
 0x628   : > { %v873_v43 = vpop.permute.xlu1 %872 }
 0x629   : > { %875 = vst.msk [vmem:[#allocation3] sm:$0xff] %vm444_vm3, %v873_v43  ;;  %2038 = vmatmul.mubr.msk.f32.vlgmr.msra.gmra.mrb[8].mxu0 %vm444_vm3, %v873_v43 }
 0x62a   : > { %v881_v44 = vld [vmem:[#allocation3 + $0x8] sm:$0xff]  ;;  %2154 = vmatpush3.bf16.msra.mxu0 %v2927_v37  ;;  %2059 = vmatprep.mubr.msk.f32.mxu0 %vm2599_vm2, %v2600_v11 }
 0x62b   : > { %2027 = vmatmul.mubr.msk.f32.vlgmr.msra.gmra.mrb[4].mxu1 %vm444_vm3, %v881_v44  ;;  %2155 = vmatprep.subr.bf16.mxu0 %v2598_v4 }
 0x62c   : > { %2148 = vmatpush3.bf16.msra.mxu1 %v2899_v8  ;;  %v878_v46 = vpop.permute.xlu1 %877  ;;  %2048 = vmatprep.mubr.msk.f32.mxu1 %vm2599_vm2, %v2600_v11 }
 0x62d   : > { %880 = vst.msk [vmem:[#allocation4] sm:$0xff] %vm444_vm3, %v878_v46  ;;  %2149 = vmatprep.subr.bf16.mxu1 %v2598_v4 }
 0x62e   : > { %2157 = vmatpush3.bf16.msra.mxu0 %v2935_v45  ;;  %v882_v63 = vld [vmem:[#allocation4 + $0x8] sm:$0xff] }
 0x62f   : > { %2164 = vmatprep.subr.bf16.mxu0 %v2598_v4 }
 0x630   : > { %2151 = vmatpush3.bf16.msra.mxu1 %v2906_v13  ;;  %v1077_v48 = vld [vmem:[#allocation3] sm:$0xff] }
 0x631   : > { %2158 = vmatprep.subr.bf16.mxu1 %v2598_v4 }
 0x633   : > { %2049 = vmatmul.mubr.msk.f32.vlgmr.msra.gmra.mrb[6].mxu1 %vm444_vm3, %v1077_v48 }
 0x634   : > { %2160 = vmatpush3.bf16.msra.mxu1 %v2931_v41  ;;  %2070 = vmatprep.mubr.msk.f32.mxu1 %vm2599_vm2, %v2600_v11  ;;  %v1078_v1 = vld [vmem:[#allocation4] sm:$0xff] }
 0x635   : > { %2161 = vmatprep.subr.bf16.mxu1 %v2598_v4 }
 0x638   : > { %2163 = vmatpush3.bf16.msra.mxu1 %v2939_v47 }
 0x639   : > { %2170 = vmatprep.subr.bf16.mxu1 %v2598_v4 }
 0x6fc   : > { %v1032_v49 = vpop.f32.mrb[8].mxu0 }
 0x6fd   : > { %v2039_v50 = vpop.f32.mrb[9].mxu0 }
 0x6fe   : > { %v960_v51 = vpop.f32.mrb[4].mxu1 }
 0x6ff   : > { %v1033_v52 = vadd.f32 %v1032_v49, %v960_v51  ;;  %v2028_v55 = vpop.f32.mrb[5].mxu1 }
 0x701   : > { %v1036_v56 = vadd.f32 %v2982_v59, %v1033_v52 }
 0x703   : > { %2328 = vtanh.f32 %v1036_v56  ;;  %v1876_v2 = vmul.f32 -1.442695, %v1036_v56 }
 0x706   : > { %v1154_v58 = vpop.f32.mrb[6].mxu1 }
 0x707   : > { %v1158_v60 = vadd.f32 %v1154_v58, %v429_v57  ;;  %v2050_v61 = vpop.f32.mrb[7].mxu1 }
 0x709   : > { %2330 = vtanh.f32 %v1158_v60  ;;  %v1879_v3 = vmul.f32 -1.442695, %v1158_v60 }
 0x70a   : > { %2332 = vpow2.f32 %v1876_v2 }
 0x70b   : > { %2334 = vpow2.f32 %v1879_v3 }
 0x70d   : > { %v2329_v62 = vpop.eup %2328 }
 0x70e   : > { %1050 = vrot.lane.b32.xlu0 %v2329_v62, %s2601_s17 }
 0x712   : > { %1045 = vrot.lane.b32.xlu0 %v882_v63, %s2602_s26 }
 0x713   : > { %v2331_v0 = vpop.eup %2330 }
 0x714   : > { %1172 = vrot.lane.b32.xlu1 %v2331_v0, %s2601_s17  ;;  %v2333_v54 = vpop.eup %2332 }
 0x715   : > { %v1040_v5 = vadd.f32 1.0, %v2333_v54  ;;  %v2335_v6 = vpop.eup %2334 }
 0x716   : > { %1167 = vrot.lane.b32.xlu0 %v1078_v1, %s2602_s26  ;;  %v1162_v7 = vadd.f32 1.0, %v2335_v6 }
 0x717   : > { %2336 = vrcp.f32 %v1040_v5 }
 0x718   : > { %2338 = vrcp.f32 %v1162_v7 }
 0x721   : > { %v2337_v9 = vpop.eup %2336 }
 0x722   : > { %v2339_v14 = vpop.eup %2338 }
 0x780   : > { %v1051_v10 = vpop.permute.xlu0 %1050 }
 0x781   : > { %v1053_v12 = vmul.f32 %v2337_v9, %v1051_v10 }
 0x783   : > { %1055 = vrot.lane.b32.xlu1 %v1053_v12, %s2602_s26 }
 0x784   : > { %v1046_v18 = vpop.permute.xlu0 %1045 }
 0x785   : > { %v1048_v19 = vmul.f32 %v2337_v9, %v1046_v18 }
 0x786   : > { %v1173_v16 = vpop.permute.xlu1 %1172 }
 0x787   : > { %v1175_v17 = vmul.f32 %v2339_v14, %v1173_v16 }
 0x788   : > { %v1168_v22 = vpop.permute.xlu0 %1167 }
 0x789   : > { %1177 = vrot.lane.b32.xlu1 %v1175_v17, %s2602_s26  ;;  %v1170_v23 = vmul.f32 %v2339_v14, %v1168_v22 }
 0x7f5   : > { %v1056_v20 = vpop.permute.xlu1 %1055 }
 0x7f6   : > { %v1058_v21 = vadd.f32 %v1056_v20, %v1048_v19 }
 0x7f8   : > { %2340 = vtanh.f32 %v1058_v21 }
 0x7fb   : > { %v1178_v24 = vpop.permute.xlu1 %1177 }
 0x7fc   : > { %v1180_v25 = vadd.f32 %v1178_v24, %v1170_v23 }
 0x7fe   : > { %2342 = vtanh.f32 %v1180_v25 }
 0x802   : > { %v2341_v26 = vpop.eup %2340 }
 0x803   : > { %1061 = vrot.lane.b32.xlu0 %v2341_v26, %s2601_s17 }
 0x808   : > { %v2343_v27 = vpop.eup %2342 }
 0x809   : > { %1183 = vrot.lane.b32.xlu1 %v2343_v27, %s2601_s17 }
 0x875   : > { %v1062_v28 = vpop.permute.xlu0 %1061 }
 0x876   : > { %v1064_v29 = vmul.f32 %v2337_v9, %v1062_v28 }
 0x878   : > { %1066 = vrot.lane.b32.xlu0 %v1064_v29, %s2602_s26 }
 0x87b   : > { %v1184_v30 = vpop.permute.xlu1 %1183 }
 0x87c   : > { %v1186_v31 = vmul.f32 %v2339_v14, %v1184_v30  ;;  %1071 = vrot.lane.b32.xlu0 %v1058_v21, %s2603_s27 }
 0x87e   : > { %1188 = vrot.lane.b32.xlu1 %v1186_v31, %s2602_s26 }
 0x882   : > { %1193 = vrot.lane.b32.xlu1 %v1180_v25, %s2603_s27 }
 0x8ea   : > { %v1067_v32 = vpop.permute.xlu0 %1066 }
 0x8eb   : > { %1069 = vst.msk [vmem:[#allocation3 + $0x8] sm:$0xff] %vm444_vm3, %v1067_v32  ;;  %1877 = vst.msk [vmem:[%s2894_s9 + $0x8] sm:$0xff] %vm444_vm3, %v1067_v32 }
 0x8ee   : > { %v1072_v33 = vpop.permute.xlu0 %1071 }
 0x8ef   : > { %1074 = vst.msk [vmem:[#allocation4 + $0x8] sm:$0xff] %vm444_vm3, %v1072_v33 }
 0x8f0   : > { %v1189_v34 = vpop.permute.xlu1 %1188 }
 0x8f1   : > { %1191 = vst.msk [vmem:[#allocation3] sm:$0xff] %vm444_vm3, %v1189_v34  ;;  %2071 = vmatmul.mubr.msk.f32.vlgmr.msra.gmra.mrb[8].mxu1 %vm444_vm3, %v1189_v34 }
 0x8f2   : > { %v1197_v35 = vld [vmem:[#allocation3 + $0x8] sm:$0xff]  ;;  %2172 = vmatpush3.bf16.msra.mxu1 %v2927_v37  ;;  %2092 = vmatprep.mubr.msk.f32.mxu1 %vm2599_vm2, %v2600_v11 }
 0x8f3   : > { %2060 = vmatmul.mubr.msk.f32.vlgmr.msra.gmra.mrb[10].mxu0 %vm444_vm3, %v1197_v35  ;;  %2173 = vmatprep.subr.bf16.mxu1 %v2598_v4 }
 0x8f4   : > { %2166 = vmatpush3.bf16.msra.mxu0 %v2899_v8  ;;  %v1194_v36 = vpop.permute.xlu1 %1193  ;;  %2081 = vmatprep.mubr.msk.f32.mxu0 %vm2599_vm2, %v2600_v11 }
 0x8f5   : > { %1196 = vst.msk [vmem:[#allocation4] sm:$0xff] %vm444_vm3, %v1194_v36  ;;  %2167 = vmatprep.subr.bf16.mxu0 %v2598_v4 }
 0x8f6   : > { %2175 = vmatpush3.bf16.msra.mxu1 %v2935_v45 }
 0x8f8   : > { %2169 = vmatpush3.bf16.msra.mxu0 %v2906_v13  ;;  %v1393_v37 = vld [vmem:[#allocation3] sm:$0xff] }
 0x8f9   : > { %2176 = vmatprep.subr.bf16.mxu0 %v2598_v4 }
 0x8fb   : > { %2082 = vmatmul.mubr.msk.f32.vlgmr.msra.gmra.mrb[12].mxu0 %vm444_vm3, %v1393_v37 }
 0x8fc   : > { %2178 = vmatpush3.bf16.msra.mxu0 %v2931_v41  ;;  %2103 = vmatprep.mubr.msk.f32.mxu0 %vm2599_vm2, %v2600_v11  ;;  %v1394_v46 = vld [vmem:[#allocation4] sm:$0xff] }
 0x8fd   : > { %2179 = vmatprep.subr.bf16.mxu0 %v2598_v4  ;;  %v1198_v4 = vld [vmem:[#allocation4 + $0x8] sm:$0xff] }
 0x900   : > { %2181 = vmatpush3.bf16.msra.mxu0 %v2939_v47 }
 0x9c4   : > { %v1348_v8 = vpop.f32.mrb[8].mxu1 }
 0x9c5   : > { %v2072_v38 = vpop.f32.mrb[9].mxu1 }
 0x9c6   : > { %v1276_v39 = vpop.f32.mrb[10].mxu0 }
 0x9c7   : > { %v1349_v45 = vadd.f32 %v1348_v8, %v1276_v39  ;;  %v2061_v40 = vpop.f32.mrb[11].mxu0 }
 0x9c9   : > { %v1352_v13 = vadd.f32 %v2982_v59, %v1349_v45 }
 0x9cb   : > { %2344 = vtanh.f32 %v1352_v13  ;;  %v1882_v48 = vmul.f32 -1.442695, %v1352_v13 }
 0x9ce   : > { %v1470_v43 = vpop.f32.mrb[12].mxu0 }
 0x9cf   : > { %v1474_v41 = vadd.f32 %v1470_v43, %v430_v42  ;;  %v2083_v44 = vpop.f32.mrb[13].mxu0 }
 0x9d1   : > { %2346 = vtanh.f32 %v1474_v41  ;;  %v1885_v49 = vmul.f32 -1.442695, %v1474_v41 }
 0x9d2   : > { %2348 = vpow2.f32 %v1882_v48 }
 0x9d3   : > { %2350 = vpow2.f32 %v1885_v49 }
 0x9d5   : > { %v2345_v11 = vpop.eup %2344 }
 0x9d6   : > { %1366 = vrot.lane.b32.xlu0 %v2345_v11, %s2601_s17 }
 0x9da   : > { %1361 = vrot.lane.b32.xlu0 %v1198_v4, %s2602_s26 }
 0x9db   : > { %v2347_v47 = vpop.eup %2346 }
 0x9dc   : > { %1488 = vrot.lane.b32.xlu1 %v2347_v47, %s2601_s17  ;;  %v2349_v15 = vpop.eup %2348 }
 0x9dd   : > { %v1356_v53 = vadd.f32 1.0, %v2349_v15  ;;  %v2351_v50 = vpop.eup %2350 }
 0x9de   : > { %1483 = vrot.lane.b32.xlu0 %v1394_v46, %s2602_s26  ;;  %v1478_v51 = vadd.f32 1.0, %v2351_v50 }
 0x9df   : > { %2352 = vrcp.f32 %v1356_v53 }
 0x9e0   : > { %2354 = vrcp.f32 %v1478_v51 }
 0x9e9   : > { %v2353_v52 = vpop.eup %2352 }
 0x9ea   : > { %v2355_v57 = vpop.eup %2354 }
 0xa48   : > { %v1367_v55 = vpop.permute.xlu0 %1366 }
 0xa49   : > { %v1369_v56 = vmul.f32 %v2353_v52, %v1367_v55 }
 0xa4b   : > { %1371 = vrot.lane.b32.xlu1 %v1369_v56, %s2602_s26 }
 0xa4c   : > { %v1362_v61 = vpop.permute.xlu0 %1361 }
 0xa4d   : > { %v1364_v62 = vmul.f32 %v2353_v52, %v1362_v61 }
 0xa4e   : > { %v1489_v58 = vpop.permute.xlu1 %1488 }
 0xa4f   : > { %v1491_v60 = vmul.f32 %v2355_v57, %v1489_v58 }
 0xa50   : > { %v1484_v1 = vpop.permute.xlu0 %1483 }
 0xa51   : > { %1493 = vrot.lane.b32.xlu1 %v1491_v60, %s2602_s26  ;;  %v1486_v2 = vmul.f32 %v2355_v57, %v1484_v1 }
 0xabd   : > { %v1372_v63 = vpop.permute.xlu1 %1371 }
 0xabe   : > { %v1374_v0 = vadd.f32 %v1372_v63, %v1364_v62 }
 0xac0   : > { %2356 = vtanh.f32 %v1374_v0 }
 0xac3   : > { %v1494_v3 = vpop.permute.xlu1 %1493 }
 0xac4   : > { %v1496_v54 = vadd.f32 %v1494_v3, %v1486_v2 }
 0xac6   : > { %2358 = vtanh.f32 %v1496_v54 }
 0xaca   : > { %v2357_v5 = vpop.eup %2356 }
 0xacb   : > { %1377 = vrot.lane.b32.xlu0 %v2357_v5, %s2601_s17 }
 0xad0   : > { %v2359_v6 = vpop.eup %2358 }
 0xad1   : > { %1499 = vrot.lane.b32.xlu1 %v2359_v6, %s2601_s17 }
 0xb3d   : > { %v1378_v7 = vpop.permute.xlu0 %1377 }
 0xb3e   : > { %v1380_v9 = vmul.f32 %v2353_v52, %v1378_v7 }
 0xb40   : > { %1382 = vrot.lane.b32.xlu0 %v1380_v9, %s2602_s26 }
 0xb43   : > { %v1500_v10 = vpop.permute.xlu1 %1499 }
 0xb44   : > { %v1502_v12 = vmul.f32 %v2355_v57, %v1500_v10  ;;  %1387 = vrot.lane.b32.xlu0 %v1374_v0, %s2603_s27 }
 0xb46   : > { %1504 = vrot.lane.b32.xlu1 %v1502_v12, %s2602_s26 }
 0xbb2   : > { %v1383_v14 = vpop.permute.xlu0 %1382 }
 0xbb3   : > { %1385 = vst.msk [vmem:[#allocation3 + $0x8] sm:$0xff] %vm444_vm3, %v1383_v14  ;;  %1883 = vst.msk [vmem:[%s2894_s9 + $0x10] sm:$0xff] %vm444_vm3, %v1383_v14 }
 0xbb6   : > { %v1388_v16 = vpop.permute.xlu0 %1387 }
 0xbb7   : > { %1390 = vst.msk [vmem:[#allocation4 + $0x8] sm:$0xff] %vm444_vm3, %v1388_v16 }
 0xbb8   : > { %v1505_v17 = vpop.permute.xlu1 %1504 }
 0xbb9   : > { %1507 = vst.msk [vmem:[#allocation3] sm:$0xff] %vm444_vm3, %v1505_v17  ;;  %2104 = vmatmul.mubr.msk.f32.vlgmr.msra.gmra.mrb[14].mxu0 %vm444_vm3, %v1505_v17 }
 0xbba   : > { %v1513_v18 = vld [vmem:[#allocation3 + $0x8] sm:$0xff] }
 0xbbb   : > { %2093 = vmatmul.mubr.msk.f32.vlgmr.msra.gmra.mrb[10].mxu1 %vm444_vm3, %v1513_v18 }
 0xbbe   : > { %v1514_v19 = vld [vmem:[#allocation4 + $0x8] sm:$0xff] }
 0xbbf   : > { %1677 = vrot.lane.b32.xlu0 %v1514_v19, %s2602_s26 }
 0xc31   : > { %v1678_v33 = vpop.permute.xlu0 %1677 }
 0xc8c   : > { %v1664_v20 = vpop.f32.mrb[14].mxu0 }
 0xc8d   : > { %v2105_v21 = vpop.f32.mrb[15].mxu0 }
 0xc8e   : > { %v1592_v22 = vpop.f32.mrb[10].mxu1 }
 0xc8f   : > { %v1665_v23 = vadd.f32 %v1664_v20, %v1592_v22  ;;  %v2094_v24 = vpop.f32.mrb[11].mxu1 }
 0xc91   : > { %v1668_v25 = vadd.f32 %v2982_v59, %v1665_v23 }
 0xc93   : > { %2360 = vtanh.f32 %v1668_v25  ;;  %v1888_v27 = vmul.f32 -1.442695, %v1668_v25 }
 0xc95   : > { %2362 = vpow2.f32 %v1888_v27 }
 0xc9d   : > { %v2361_v26 = vpop.eup %2360 }
 0xc9e   : > { %1682 = vrot.lane.b32.xlu1 %v2361_v26, %s2601_s17 }
 0xc9f   : > { %v2363_v28 = vpop.eup %2362 }
 0xca0   : > { %v1672_v29 = vadd.f32 1.0, %v2363_v28 }
 0xca2   : > { %2364 = vrcp.f32 %v1672_v29 }
 0xcac   : > { %v2365_v30 = vpop.eup %2364 }
 0xcad   : > { %v1680_v34 = vmul.f32 %v2365_v30, %v1678_v33 }
 0xd10   : > { %v1683_v31 = vpop.permute.xlu1 %1682 }
 0xd11   : > { %v1685_v32 = vmul.f32 %v2365_v30, %v1683_v31 }
 0xd13   : > { %1687 = vrot.lane.b32.xlu1 %v1685_v32, %s2602_s26 }
 0xd85   : > { %v1688_v59 = vpop.permute.xlu1 %1687 }
 0xd86   : > { %v1690_v35 = vadd.f32 %v1688_v59, %v1680_v34 }
 0xd88   : > { %2366 = vtanh.f32 %v1690_v35 }
 0xd92   : > { %v2367_v36 = vpop.eup %2366 }
 0xd93   : > { %1693 = vrot.lane.b32.xlu0 %v2367_v36, %s2601_s17  ;;  %s1710_s17 = scalar_lea.sflag [#allocation7], %s2876_s22 }
 0xd97   : > { %1509 = vrot.lane.b32.xlu0 %v1496_v54, %s2603_s27 }
 0xe05   : > { %v1694_v37 = vpop.permute.xlu0 %1693 }
 0xe06   : > { %v1696_v8 = vmul.f32 %v2365_v30, %v1694_v37 }
 0xe08   : > { %1698 = vrot.lane.b32.xlu1 %v1696_v8, %s2602_s26  ;;  %s2604_s26 = smov [#allocation13]  }
 0xe09   : > { %v1510_v38 = vpop.permute.xlu0 %1509 }
 0xe0a   : > { %1512 = vst.msk [vmem:[#allocation4] sm:$0xff] %vm444_vm3, %v1510_v38 }
 0xe0c   : > { %1703 = vrot.lane.b32.xlu1 %v1690_v35, %s2603_s27  ;;  %s2486_s27 = sshll.u32 %s2604_s26, 4  ;;  %s2487_s27 = int_to_ptr.vmem [resolvable:$false] %s2486_s27 }
 0xe0d   : > { %s2488_s14 = scalar_lea.vmem %s2487_s27, 1024  ;;  %p2489_p2 = scmp.lt.s32.totalorder %s3104_s13, %s2487_s27 }
 0xe0e   : > { %p2490_p6 = scmp.lt.s32.totalorder %s2488_s14, %s2482_s21 }
 0xe10   : > { %p2491_p10 = por %p2490_p6, %p2489_p2 }
 0xe12   : > { %p2492_p13 = pnand %p2491_p10, %p2485_p12 }
 0xe7a   : > { %v1699_v39 = vpop.permute.xlu1 %1698 }
 0xe7b   : > { %1701 = vst.msk [vmem:[#allocation3 + $0x8] sm:$0xff] %vm444_vm3, %v1699_v39  ;;  %1889 = vst.msk [vmem:[%s2894_s9 + $0x18] sm:$0xff] %vm444_vm3, %v1699_v39 }
 0xe7c   : > { %2495 = shalt.err (!%p2492_p13)
}
 0xe7d   : > { %s2496_s9 = scalar_lea.hbm %s3102_s6, 512  ;;  %s2500_s16 = scalar_lea.hbm %s3204_s29, 2048 }
 0xe7e   : > { %p2497_p0 = scmp.ne.s32.totalorder %s3102_s6, %s2496_s9  ;;  %p2501_p11 = scmp.lt.u32.totalorder %s3102_s6, %s3204_s29 }
 0xe7f   : > { %p2502_p1 = scmp.lt.u32.totalorder %s2500_s16, %s2496_s9  ;;  %p2504_p5 = scmp.lt.u32.totalorder %s2496_s9, %s3102_s6 }
 0xe80   : > { %p2498_p4 = pnand %p2497_p0, %p3205_p3 }
 0xe81   : > { %p2503_p8 = por %p2502_p1, %p2501_p11 }
 0xe82   : > { %p2499_p9 = pneg %p2498_p4 }
 0xe83   : > { %p2505_p7 = por %p2504_p5, %p2503_p8 }
 0xe85   : > { %p2506_p12 = pnand %p2505_p7, %p2499_p9 }
 0xe87   : > { %2509 = shalt.err (!%p2506_p12)
}
 0xe88   : > { %s2605_s15 = smov 128   ;;  %s2606_s10 = smov 256   ;;  %v1704_v45 = vpop.permute.xlu1 %1703 }
 0xe89   : > { %s2607_s18 = smov 8   ;;  %1706 = vst.msk [vmem:[#allocation4 + $0x8] sm:$0xff] %vm444_vm3, %v1704_v45 }
 0xe8a   : > { %2196 = dma.vmem_to_hbm [thread:$0]  (%p3205_p3), %s3104_s13, 512, %s3102_s6, %s1710_s17, %s2605_s15, %s2606_s10, %s2607_s18  }
 0xe8b PF: > { %s3206_s21 = sld [smem:[#allocation20_spill]]  ;;  %s3207_s26 = sld [smem:[#allocation18_spill]] }
 0xe8c   : > { %s3208_s27 = sld [smem:[#allocation22_spill]] }
 0xe91   : > { %p2223_p2 = scmp.ge.s32.totalorder %s3206_s21, 2  ;;  %s1740_s14 = sand.u32 1, %s3207_s26  }
 0xe92   : > { %p3209_p6 = scmp.ne.s32.totalorder %s3208_s27, 0  ;;  %s1741_s9 = scalar_lea.sflag [#allocation7], %s1740_s14 }
 0xe94   : > { %p2213_p10 = pnand %p2223_p2, %p3209_p6 }
 0xe96   : > { %2555 = dma.done.wait (!%p2213_p10), %s1741_s9, 512  }
 0xe97   : > { %2557 = vsyncadd (!%p2213_p10), %s1741_s9, 4294966784  ;;  %s23_s25 = sadd.s32 1, %s3206_s21   ;;  %s3210_s18 = smov %s2564_s19 }
 0xe98   : > { %p20_p13 = scmp.ge.s32.totalorder %s23_s25, 6   ;;  %s3211_s19 = smov %s2568_s20 }
 0xe99   : > { %s3212_s20 = smov %s2871_s8  ;;  %s3213_s21 = smov %s2580_s23 }
 0xe9a   : > { %s3214_s22 = smov %s2584_s24  ;;  %s3215_s23 = smov %s3218_s28 }
 0xe9b   : > { %s3216_s24 = smov %s3222_s5  ;;  %22 = sbr.rel (!%p20_p13) target bundleno = 11 (0xb), region = 111 }
 0xea2   :  { %1746 = vsyncpa [#allocation6], 1 }
 0xea3   :  { %1748 = vsyncpa [#allocation6 + $0x1], 1 }
 0xea4   :  { %1749 = vsyncpa [#allocation9], 1 }
 0xea5   :  { %1750 = vsyncpa [#allocation12], 1 }
 0xea6   :  { %1751 = vsyncpa [#allocation7], 1 }
 0xea7   :  { %1753 = vsyncpa [#allocation7 + $0x1], 1 }

</bundles_post_ra>
